<compile_context>
chip_gen: v7x
topology: tpu7x:2x2x1
jax: 0.10.0
libtpu: 0.0.40
codegen_flags: <defaults>
</compile_context>

<pallas_src>
import functools

import jax
import jax.numpy as jnp
from jax import lax
from jax.experimental import pallas as pl
from jax.experimental.pallas import tpu as pltpu


# ----------------------------------------------------------------------------
# Fused decoder kernel.
#
# Inputs (all full-array VMEM blocks, time-major / flat layouts):
#   x        : (W*Bp, Din)                    time-major, batch padded to Bp
#   per layer: w_ih (Din_l, 4H), w_hh (H, 4H), b (1, 4H)   [b = b_ih + b_hh]
#   w_head   : (H, 2)   [w_mu | w_logvar]
#   b_head   : (1, 2)
# Output:
#   out      : (W*Bp, 2)   column 0 = mu, column 1 = tanh(logvar)
# Scratch:
#   hseq     : (W*Bp, H)   hidden sequence of the current layer
#   gproj    : (W*Bp, 4H)  hoisted input projection (+bias) of current layer
# ----------------------------------------------------------------------------
def _decoder_kernel(*refs, num_layers, seq_len, b_pad, hidden):
    H = hidden
    W = seq_len
    B = b_pad

    x_ref = refs[0]
    layer_refs = [(refs[1 + 3 * l], refs[2 + 3 * l], refs[3 + 3 * l])
                  for l in range(num_layers)]
    base = 1 + 3 * num_layers
    whead_ref, bhead_ref, out_ref, hseq_ref, gproj_ref = refs[base:base + 5]

    for layer in range(num_layers):
        wih_ref, whh_ref, b_ref = layer_refs[layer]
        whh = whh_ref[...]  # (H, 4H), hoisted out of the loop

        # Layer input: original sequence for layer 0, previous layer's hidden
        # sequence (already in VMEM scratch) for deeper layers.
        xin = x_ref[...] if layer == 0 else hseq_ref[...]

        # Hoisted input projection + combined bias: ONE big MXU call per layer
        # (broadcast of the bias happens once here, not per timestep).
        gproj_ref[...] = (
            jnp.dot(xin, wih_ref[...], preferred_element_type=jnp.float32)
            + b_ref[...]
        )

        h0 = jnp.zeros((B, H), jnp.float32)
        c0 = jnp.zeros((B, H), jnp.float32)

        def step(t, carry, whh=whh):
            h, c = carry
            row = pl.multiple_of(t * B, B)
            gates = gproj_ref[pl.ds(row, B), :] + jnp.dot(
                h, whh, preferred_element_type=jnp.float32)      # (B, 4H)
            # Two whole-vreg EUP passes instead of four masked ones, then
            # static lane slices (PyTorch gate order: i, f, g, o).
            sig = jax.nn.sigmoid(gates)
            tnh = jnp.tanh(gates)
            i_g = sig[:, 0:H]
            f_g = sig[:, H:2 * H]
            g_g = tnh[:, 2 * H:3 * H]
            o_g = sig[:, 3 * H:4 * H]
            c_new = f_g * c + i_g * g_g
            h_new = o_g * jnp.tanh(c_new)
            hseq_ref[pl.ds(row, B), :] = h_new
            return (h_new, c_new)

        # Short static trip-count: fully unroll for LLO scheduler visibility.
        lax.fori_loop(0, W, step, (h0, c0), unroll=True)

    # Fused heads: single (W*B, H) @ (H, 2) matmul; tanh on logvar column only.
    head = jnp.dot(hseq_ref[...], whead_ref[...],
                   preferred_element_type=jnp.float32) + bhead_ref[...]
    col = lax.broadcasted_iota(jnp.int32, head.shape, 1)
    out_ref[...] = jnp.where(col == 0, head, jnp.tanh(head))


# ----------------------------------------------------------------------------
# Wrapper: layout plumbing (tiny arrays) + the single pallas_call.
# ----------------------------------------------------------------------------
def decoder_forward(params, x):
    """x: (B, window, latent) -> (mu, logvar) each (B, window, 1)."""
    B, Wn, Din = x.shape
    H = params["lstm"][0]["w_hh_t"].shape[0]
    num_layers = len(params["lstm"])
    B_pad = ((B + 7) // 8) * 8  # pad batch to the f32 sublane count

    # time-major + batch pad + flatten to (W*Bp, Din); ~hundreds of bytes here.
    x_tm = jnp.transpose(x.astype(jnp.float32), (1, 0, 2))
    if B_pad != B:
        x_tm = jnp.pad(x_tm, ((0, 0), (0, B_pad - B), (0, 0)))
    x_flat = x_tm.reshape(Wn * B_pad, Din)

    args = [x_flat]
    for lp in params["lstm"]:
        args += [lp["w_ih_t"], lp["w_hh_t"], lp["b"]]
    w_head = jnp.concatenate([params["w_mu"], params["w_lv"]], axis=1)  # (H, 2)
    b_head = jnp.concatenate([params["b_mu"], params["b_lv"]], axis=1)  # (1, 2)
    args += [w_head, b_head]

    vmem = pl.BlockSpec(memory_space=pltpu.MemorySpace.VMEM)
    kernel = functools.partial(
        _decoder_kernel,
        num_layers=num_layers, seq_len=Wn, b_pad=B_pad, hidden=H)

    out = pl.pallas_call(
        kernel,
        out_shape=jax.ShapeDtypeStruct((Wn * B_pad, 2), jnp.float32),
        in_specs=[vmem] * len(args),
        out_specs=vmem,
        scratch_shapes=[
            pltpu.VMEM((Wn * B_pad, H), jnp.float32),       # hidden sequence
            pltpu.VMEM((Wn * B_pad, 4 * H), jnp.float32),   # hoisted projection
        ],
    )(*args)
    # TODO(synk): at scaled-up B/W/H add a batch grid (parallel) + explicit
    # vmem_limit_bytes for v7x (64 MiB VMEM, 2 TCs); unnecessary at these shapes.

    out = out.reshape(Wn, B_pad, 2)[:, :B, :]               # (W, B, 2)
    mu = jnp.transpose(out[..., 0], (1, 0))[..., None]      # (B, W, 1)
    logvar = jnp.transpose(out[..., 1], (1, 0))[..., None]  # (B, W, 1)
    return mu, logvar


# ----------------------------------------------------------------------------
# Parameter init (deterministic, PyTorch-style uniform(-1/sqrt(H), 1/sqrt(H)))
# ----------------------------------------------------------------------------
def init_decoder_params(key, window_size, lstm_layers, rnn_hidden_size, latent_size):
    H = rnn_hidden_size
    bound = 1.0 / jnp.sqrt(jnp.float32(H))
    params = {"lstm": []}
    for layer in range(lstm_layers):
        d_in = latent_size if layer == 0 else H
        key, k1, k2, k3, k4 = jax.random.split(key, 5)
        w_ih = jax.random.uniform(k1, (4 * H, d_in), jnp.float32, -bound, bound)
        w_hh = jax.random.uniform(k2, (4 * H, H), jnp.float32, -bound, bound)
        b_ih = jax.random.uniform(k3, (4 * H,), jnp.float32, -bound, bound)
        b_hh = jax.random.uniform(k4, (4 * H,), jnp.float32, -bound, bound)
        params["lstm"].append(
            {
                "w_ih_t": w_ih.T,                       # (Din, 4H)
                "w_hh_t": w_hh.T,                       # (H, 4H)
                "b": (b_ih + b_hh).reshape(1, 4 * H),   # (1, 4H)
            }
        )
    key, k1, k2, k3, k4 = jax.random.split(key, 5)
    params["w_mu"] = jax.random.uniform(k1, (H, 1), jnp.float32, -bound, bound)
    params["b_mu"] = jax.random.uniform(k2, (1, 1), jnp.float32, -bound, bound)
    params["w_lv"] = jax.random.uniform(k3, (H, 1), jnp.float32, -bound, bound)
    params["b_lv"] = jax.random.uniform(k4, (1, 1), jnp.float32, -bound, bound)
    return params


# ----------------------------------------------------------------------------
# Pure-JAX reference for a correctness sanity check
# ----------------------------------------------------------------------------
def decoder_forward_ref(params, x):
    B, Wn, _ = x.shape
    seq = x.astype(jnp.float32)
    for lp in params["lstm"]:
        H = lp["w_hh_t"].shape[0]
        wih, whh, b = lp["w_ih_t"], lp["w_hh_t"], lp["b"]

        def step(carry, x_t):
            h, c = carry
            gates = x_t @ wih + h @ whh + b
            i = jax.nn.sigmoid(gates[:, 0:H])
            f = jax.nn.sigmoid(gates[:, H:2 * H])
            g = jnp.tanh(gates[:, 2 * H:3 * H])
            o = jax.nn.sigmoid(gates[:, 3 * H:4 * H])
            c_new = f * c + i * g
            h_new = o * jnp.tanh(c_new)
            return (h_new, c_new), h_new

        init = (jnp.zeros((B, H), jnp.float32), jnp.zeros((B, H), jnp.float32))
        _, hs = lax.scan(step, init, jnp.transpose(seq, (1, 0, 2)))
        seq = jnp.transpose(hs, (1, 0, 2))
    hidden = seq.reshape(B * Wn, -1)
    mu = hidden @ params["w_mu"] + params["b_mu"]
    lv = jnp.tanh(hidden @ params["w_lv"] + params["b_lv"])
    return mu.reshape(B, Wn, 1), lv.reshape(B, Wn, 1)


if __name__ == "__main__":
    # Small shapes consistent with the module's forward:
    batch, window_size, lstm_layers, rnn_hidden_size, latent_size = 2, 8, 2, 32, 8

    key = jax.random.PRNGKey(0)
    key, pkey, xkey = jax.random.split(key, 3)
    params = init_decoder_params(pkey, window_size, lstm_layers,
                                 rnn_hidden_size, latent_size)
    x = jax.random.normal(xkey, (batch, window_size, latent_size), jnp.float32)

    mu, logvar = decoder_forward(params, x)
    mu = jax.block_until_ready(mu)
    logvar = jax.block_until_ready(logvar)

    mu_ref, lv_ref = decoder_forward_ref(params, x)
    assert mu.shape == (batch, window_size, 1)
    assert logvar.shape == (batch, window_size, 1)
    assert jnp.allclose(mu, mu_ref, atol=1e-4, rtol=1e-4)
    assert jnp.allclose(logvar, lv_ref, atol=1e-4, rtol=1e-4)

    print("KERNEL_OK")
</pallas_src>

<mosaic_0001>
module attributes {stable_mosaic.version = 11 : i64} {
  func.func @_decoder_kernel(%arg0: memref<64x8xf32, #tpu.memory_space<vmem>>, %arg1: memref<8x128xf32, #tpu.memory_space<vmem>>, %arg2: memref<32x128xf32, #tpu.memory_space<vmem>>, %arg3: memref<1x128xf32, #tpu.memory_space<vmem>>, %arg4: memref<32x128xf32, #tpu.memory_space<vmem>>, %arg5: memref<32x128xf32, #tpu.memory_space<vmem>>, %arg6: memref<1x128xf32, #tpu.memory_space<vmem>>, %arg7: memref<32x2xf32, #tpu.memory_space<vmem>>, %arg8: memref<1x2xf32, #tpu.memory_space<vmem>>, %arg9: memref<64x2xf32, #tpu.memory_space<vmem>>, %arg10: memref<64x32xf32, #tpu.memory_space<vmem>>, %arg11: memref<64x128xf32, #tpu.memory_space<vmem>>) attributes {dimension_semantics = [], scalar_prefetch = 0 : i64, scratch_operands = 2 : i64, tpu.core_type = #tpu.core_type<tc>} {
    %c0 = arith.constant 0 : index
    %c0_0 = arith.constant 0 : index
    %0 = vector.load %arg2[%c0, %c0_0] : memref<32x128xf32, #tpu.memory_space<vmem>>, vector<32x128xf32>
    %c0_1 = arith.constant 0 : index
    %c0_2 = arith.constant 0 : index
    %1 = vector.load %arg0[%c0_1, %c0_2] : memref<64x8xf32, #tpu.memory_space<vmem>>, vector<64x8xf32>
    %c0_3 = arith.constant 0 : index
    %c0_4 = arith.constant 0 : index
    %2 = vector.load %arg1[%c0_3, %c0_4] : memref<8x128xf32, #tpu.memory_space<vmem>>, vector<8x128xf32>
    %cst = arith.constant dense<0.000000e+00> : vector<64x128xf32>
    %3 = tpu.matmul %1, %2, %cst {dimension_numbers = #tpu.dot_dimension_numbers<[1], [0], [0], [1], [0, 0, 1, 1], [], []>} : vector<64x8xf32>, vector<8x128xf32>, vector<64x128xf32> -> vector<64x128xf32>
    %c0_5 = arith.constant 0 : index
    %c0_6 = arith.constant 0 : index
    %4 = vector.load %arg3[%c0_5, %c0_6] : memref<1x128xf32, #tpu.memory_space<vmem>>, vector<1x128xf32>
    %5 = vector.broadcast %4 : vector<1x128xf32> to vector<64x128xf32>
    %6 = arith.addf %3, %5 : vector<64x128xf32>
    %c0_7 = arith.constant 0 : index
    %c0_8 = arith.constant 0 : index
    %7 = vector.load %arg11[%c0_7, %c0_8] : memref<64x128xf32, #tpu.memory_space<vmem>>, vector<64x128xf32>
    tpu.vector_store %arg11[%c0_7, %c0_8], %6 {strides = array<i32>} : memref<64x128xf32, #tpu.memory_space<vmem>>, vector<64x128xf32>,
    %cst_9 = arith.constant 0.000000e+00 : f32
    %8 = vector.broadcast %cst_9 : f32 to vector<8x32xf32>
    %cst_10 = arith.constant 0.000000e+00 : f32
    %9 = vector.broadcast %cst_10 : f32 to vector<8x32xf32>
    %c0_i32 = arith.constant 0 : i32
    %c8_i32 = arith.constant 8 : i32
    %10 = arith.muli %c0_i32, %c8_i32 : i32
    %11 = tpu.assume_multiple %10, 8 : i32
    %12 = arith.index_cast %11 : i32 to index
    %c0_11 = arith.constant 0 : index
    %13 = vector.load %arg11[%12, %c0_11] : memref<64x128xf32, #tpu.memory_space<vmem>>, vector<8x128xf32>
    %cst_12 = arith.constant dense<0.000000e+00> : vector<8x128xf32>
    %14 = tpu.matmul %8, %0, %cst_12 {dimension_numbers = #tpu.dot_dimension_numbers<[1], [0], [0], [1], [0, 0, 1, 1], [], []>} : vector<8x32xf32>, vector<32x128xf32>, vector<8x128xf32> -> vector<8x128xf32>
    %15 = arith.addf %13, %14 : vector<8x128xf32>
    %16 = arith.negf %15 : vector<8x128xf32>
    %17 = math.exp %16 : vector<8x128xf32>
    %cst_13 = arith.constant 1.000000e+00 : f32
    %18 = vector.broadcast %cst_13 : f32 to vector<8x128xf32>
    %19 = arith.addf %18, %17 : vector<8x128xf32>
    %20 = arith.divf %18, %19 : vector<8x128xf32>
    %21 = math.tanh %15 : vector<8x128xf32>
    %22 = vector.extract_strided_slice %20 {offsets = [0, 0], sizes = [8, 32], strides = [1, 1]} : vector<8x128xf32> to vector<8x32xf32>
    %23 = vector.extract_strided_slice %20 {offsets = [0, 32], sizes = [8, 32], strides = [1, 1]} : vector<8x128xf32> to vector<8x32xf32>
    %24 = vector.extract_strided_slice %21 {offsets = [0, 64], sizes = [8, 32], strides = [1, 1]} : vector<8x128xf32> to vector<8x32xf32>
    %25 = vector.extract_strided_slice %20 {offsets = [0, 96], sizes = [8, 32], strides = [1, 1]} : vector<8x128xf32> to vector<8x32xf32>
    %26 = arith.mulf %23, %9 : vector<8x32xf32>
    %27 = arith.mulf %22, %24 : vector<8x32xf32>
    %28 = arith.addf %26, %27 : vector<8x32xf32>
    %29 = math.tanh %28 : vector<8x32xf32>
    %30 = arith.mulf %25, %29 : vector<8x32xf32>
    %31 = arith.index_cast %11 : i32 to index
    %c0_14 = arith.constant 0 : index
    %32 = vector.load %arg10[%31, %c0_14] : memref<64x32xf32, #tpu.memory_space<vmem>>, vector<8x32xf32>
    tpu.vector_store %arg10[%31, %c0_14], %30 {strides = array<i32>} : memref<64x32xf32, #tpu.memory_space<vmem>>, vector<8x32xf32>,
    %c1_i32 = arith.constant 1 : i32
    %c8_i32_15 = arith.constant 8 : i32
    %33 = arith.muli %c1_i32, %c8_i32_15 : i32
    %34 = tpu.assume_multiple %33, 8 : i32
    %35 = arith.index_cast %34 : i32 to index
    %c0_16 = arith.constant 0 : index
    %36 = vector.load %arg11[%35, %c0_16] : memref<64x128xf32, #tpu.memory_space<vmem>>, vector<8x128xf32>
    %cst_17 = arith.constant dense<0.000000e+00> : vector<8x128xf32>
    %37 = tpu.matmul %30, %0, %cst_17 {dimension_numbers = #tpu.dot_dimension_numbers<[1], [0], [0], [1], [0, 0, 1, 1], [], []>} : vector<8x32xf32>, vector<32x128xf32>, vector<8x128xf32> -> vector<8x128xf32>
    %38 = arith.addf %36, %37 : vector<8x128xf32>
    %39 = arith.negf %38 : vector<8x128xf32>
    %40 = math.exp %39 : vector<8x128xf32>
    %cst_18 = arith.constant 1.000000e+00 : f32
    %41 = vector.broadcast %cst_18 : f32 to vector<8x128xf32>
    %42 = arith.addf %41, %40 : vector<8x128xf32>
    %43 = arith.divf %41, %42 : vector<8x128xf32>
    %44 = math.tanh %38 : vector<8x128xf32>
    %45 = vector.extract_strided_slice %43 {offsets = [0, 0], sizes = [8, 32], strides = [1, 1]} : vector<8x128xf32> to vector<8x32xf32>
    %46 = vector.extract_strided_slice %43 {offsets = [0, 32], sizes = [8, 32], strides = [1, 1]} : vector<8x128xf32> to vector<8x32xf32>
    %47 = vector.extract_strided_slice %44 {offsets = [0, 64], sizes = [8, 32], strides = [1, 1]} : vector<8x128xf32> to vector<8x32xf32>
    %48 = vector.extract_strided_slice %43 {offsets = [0, 96], sizes = [8, 32], strides = [1, 1]} : vector<8x128xf32> to vector<8x32xf32>
    %49 = arith.mulf %46, %28 : vector<8x32xf32>
    %50 = arith.mulf %45, %47 : vector<8x32xf32>
    %51 = arith.addf %49, %50 : vector<8x32xf32>
    %52 = math.tanh %51 : vector<8x32xf32>
    %53 = arith.mulf %48, %52 : vector<8x32xf32>
    %54 = arith.index_cast %34 : i32 to index
    %c0_19 = arith.constant 0 : index
    %55 = vector.load %arg10[%54, %c0_19] : memref<64x32xf32, #tpu.memory_space<vmem>>, vector<8x32xf32>
    tpu.vector_store %arg10[%54, %c0_19], %53 {strides = array<i32>} : memref<64x32xf32, #tpu.memory_space<vmem>>, vector<8x32xf32>,
    %c2_i32 = arith.constant 2 : i32
    %c8_i32_20 = arith.constant 8 : i32
    %56 = arith.muli %c2_i32, %c8_i32_20 : i32
    %57 = tpu.assume_multiple %56, 8 : i32
    %58 = arith.index_cast %57 : i32 to index
    %c0_21 = arith.constant 0 : index
    %59 = vector.load %arg11[%58, %c0_21] : memref<64x128xf32, #tpu.memory_space<vmem>>, vector<8x128xf32>
    %cst_22 = arith.constant dense<0.000000e+00> : vector<8x128xf32>
    %60 = tpu.matmul %53, %0, %cst_22 {dimension_numbers = #tpu.dot_dimension_numbers<[1], [0], [0], [1], [0, 0, 1, 1], [], []>} : vector<8x32xf32>, vector<32x128xf32>, vector<8x128xf32> -> vector<8x128xf32>
    %61 = arith.addf %59, %60 : vector<8x128xf32>
    %62 = arith.negf %61 : vector<8x128xf32>
    %63 = math.exp %62 : vector<8x128xf32>
    %cst_23 = arith.constant 1.000000e+00 : f32
    %64 = vector.broadcast %cst_23 : f32 to vector<8x128xf32>
    %65 = arith.addf %64, %63 : vector<8x128xf32>
    %66 = arith.divf %64, %65 : vector<8x128xf32>
    %67 = math.tanh %61 : vector<8x128xf32>
    %68 = vector.extract_strided_slice %66 {offsets = [0, 0], sizes = [8, 32], strides = [1, 1]} : vector<8x128xf32> to vector<8x32xf32>
    %69 = vector.extract_strided_slice %66 {offsets = [0, 32], sizes = [8, 32], strides = [1, 1]} : vector<8x128xf32> to vector<8x32xf32>
    %70 = vector.extract_strided_slice %67 {offsets = [0, 64], sizes = [8, 32], strides = [1, 1]} : vector<8x128xf32> to vector<8x32xf32>
    %71 = vector.extract_strided_slice %66 {offsets = [0, 96], sizes = [8, 32], strides = [1, 1]} : vector<8x128xf32> to vector<8x32xf32>
    %72 = arith.mulf %69, %51 : vector<8x32xf32>
    %73 = arith.mulf %68, %70 : vector<8x32xf32>
    %74 = arith.addf %72, %73 : vector<8x32xf32>
    %75 = math.tanh %74 : vector<8x32xf32>
    %76 = arith.mulf %71, %75 : vector<8x32xf32>
    %77 = arith.index_cast %57 : i32 to index
    %c0_24 = arith.constant 0 : index
    %78 = vector.load %arg10[%77, %c0_24] : memref<64x32xf32, #tpu.memory_space<vmem>>, vector<8x32xf32>
    tpu.vector_store %arg10[%77, %c0_24], %76 {strides = array<i32>} : memref<64x32xf32, #tpu.memory_space<vmem>>, vector<8x32xf32>,
    %c3_i32 = arith.constant 3 : i32
    %c8_i32_25 = arith.constant 8 : i32
    %79 = arith.muli %c3_i32, %c8_i32_25 : i32
    %80 = tpu.assume_multiple %79, 8 : i32
    %81 = arith.index_cast %80 : i32 to index
    %c0_26 = arith.constant 0 : index
    %82 = vector.load %arg11[%81, %c0_26] : memref<64x128xf32, #tpu.memory_space<vmem>>, vector<8x128xf32>
    %cst_27 = arith.constant dense<0.000000e+00> : vector<8x128xf32>
    %83 = tpu.matmul %76, %0, %cst_27 {dimension_numbers = #tpu.dot_dimension_numbers<[1], [0], [0], [1], [0, 0, 1, 1], [], []>} : vector<8x32xf32>, vector<32x128xf32>, vector<8x128xf32> -> vector<8x128xf32>
    %84 = arith.addf %82, %83 : vector<8x128xf32>
    %85 = arith.negf %84 : vector<8x128xf32>
    %86 = math.exp %85 : vector<8x128xf32>
    %cst_28 = arith.constant 1.000000e+00 : f32
    %87 = vector.broadcast %cst_28 : f32 to vector<8x128xf32>
    %88 = arith.addf %87, %86 : vector<8x128xf32>
    %89 = arith.divf %87, %88 : vector<8x128xf32>
    %90 = math.tanh %84 : vector<8x128xf32>
    %91 = vector.extract_strided_slice %89 {offsets = [0, 0], sizes = [8, 32], strides = [1, 1]} : vector<8x128xf32> to vector<8x32xf32>
    %92 = vector.extract_strided_slice %89 {offsets = [0, 32], sizes = [8, 32], strides = [1, 1]} : vector<8x128xf32> to vector<8x32xf32>
    %93 = vector.extract_strided_slice %90 {offsets = [0, 64], sizes = [8, 32], strides = [1, 1]} : vector<8x128xf32> to vector<8x32xf32>
    %94 = vector.extract_strided_slice %89 {offsets = [0, 96], sizes = [8, 32], strides = [1, 1]} : vector<8x128xf32> to vector<8x32xf32>
    %95 = arith.mulf %92, %74 : vector<8x32xf32>
    %96 = arith.mulf %91, %93 : vector<8x32xf32>
    %97 = arith.addf %95, %96 : vector<8x32xf32>
    %98 = math.tanh %97 : vector<8x32xf32>
    %99 = arith.mulf %94, %98 : vector<8x32xf32>
    %100 = arith.index_cast %80 : i32 to index
    %c0_29 = arith.constant 0 : index
    %101 = vector.load %arg10[%100, %c0_29] : memref<64x32xf32, #tpu.memory_space<vmem>>, vector<8x32xf32>
    tpu.vector_store %arg10[%100, %c0_29], %99 {strides = array<i32>} : memref<64x32xf32, #tpu.memory_space<vmem>>, vector<8x32xf32>,
    %c4_i32 = arith.constant 4 : i32
    %c8_i32_30 = arith.constant 8 : i32
    %102 = arith.muli %c4_i32, %c8_i32_30 : i32
    %103 = tpu.assume_multiple %102, 8 : i32
    %104 = arith.index_cast %103 : i32 to index
    %c0_31 = arith.constant 0 : index
    %105 = vector.load %arg11[%104, %c0_31] : memref<64x128xf32, #tpu.memory_space<vmem>>, vector<8x128xf32>
    %cst_32 = arith.constant dense<0.000000e+00> : vector<8x128xf32>
    %106 = tpu.matmul %99, %0, %cst_32 {dimension_numbers = #tpu.dot_dimension_numbers<[1], [0], [0], [1], [0, 0, 1, 1], [], []>} : vector<8x32xf32>, vector<32x128xf32>, vector<8x128xf32> -> vector<8x128xf32>
    %107 = arith.addf %105, %106 : vector<8x128xf32>
    %108 = arith.negf %107 : vector<8x128xf32>
    %109 = math.exp %108 : vector<8x128xf32>
    %cst_33 = arith.constant 1.000000e+00 : f32
    %110 = vector.broadcast %cst_33 : f32 to vector<8x128xf32>
    %111 = arith.addf %110, %109 : vector<8x128xf32>
    %112 = arith.divf %110, %111 : vector<8x128xf32>
    %113 = math.tanh %107 : vector<8x128xf32>
    %114 = vector.extract_strided_slice %112 {offsets = [0, 0], sizes = [8, 32], strides = [1, 1]} : vector<8x128xf32> to vector<8x32xf32>
    %115 = vector.extract_strided_slice %112 {offsets = [0, 32], sizes = [8, 32], strides = [1, 1]} : vector<8x128xf32> to vector<8x32xf32>
    %116 = vector.extract_strided_slice %113 {offsets = [0, 64], sizes = [8, 32], strides = [1, 1]} : vector<8x128xf32> to vector<8x32xf32>
    %117 = vector.extract_strided_slice %112 {offsets = [0, 96], sizes = [8, 32], strides = [1, 1]} : vector<8x128xf32> to vector<8x32xf32>
    %118 = arith.mulf %115, %97 : vector<8x32xf32>
    %119 = arith.mulf %114, %116 : vector<8x32xf32>
    %120 = arith.addf %118, %119 : vector<8x32xf32>
    %121 = math.tanh %120 : vector<8x32xf32>
    %122 = arith.mulf %117, %121 : vector<8x32xf32>
    %123 = arith.index_cast %103 : i32 to index
    %c0_34 = arith.constant 0 : index
    %124 = vector.load %arg10[%123, %c0_34] : memref<64x32xf32, #tpu.memory_space<vmem>>, vector<8x32xf32>
    tpu.vector_store %arg10[%123, %c0_34], %122 {strides = array<i32>} : memref<64x32xf32, #tpu.memory_space<vmem>>, vector<8x32xf32>,
    %c5_i32 = arith.constant 5 : i32
    %c8_i32_35 = arith.constant 8 : i32
    %125 = arith.muli %c5_i32, %c8_i32_35 : i32
    %126 = tpu.assume_multiple %125, 8 : i32
    %127 = arith.index_cast %126 : i32 to index
    %c0_36 = arith.constant 0 : index
    %128 = vector.load %arg11[%127, %c0_36] : memref<64x128xf32, #tpu.memory_space<vmem>>, vector<8x128xf32>
    %cst_37 = arith.constant dense<0.000000e+00> : vector<8x128xf32>
    %129 = tpu.matmul %122, %0, %cst_37 {dimension_numbers = #tpu.dot_dimension_numbers<[1], [0], [0], [1], [0, 0, 1, 1], [], []>} : vector<8x32xf32>, vector<32x128xf32>, vector<8x128xf32> -> vector<8x128xf32>
    %130 = arith.addf %128, %129 : vector<8x128xf32>
    %131 = arith.negf %130 : vector<8x128xf32>
    %132 = math.exp %131 : vector<8x128xf32>
    %cst_38 = arith.constant 1.000000e+00 : f32
    %133 = vector.broadcast %cst_38 : f32 to vector<8x128xf32>
    %134 = arith.addf %133, %132 : vector<8x128xf32>
    %135 = arith.divf %133, %134 : vector<8x128xf32>
    %136 = math.tanh %130 : vector<8x128xf32>
    %137 = vector.extract_strided_slice %135 {offsets = [0, 0], sizes = [8, 32], strides = [1, 1]} : vector<8x128xf32> to vector<8x32xf32>
    %138 = vector.extract_strided_slice %135 {offsets = [0, 32], sizes = [8, 32], strides = [1, 1]} : vector<8x128xf32> to vector<8x32xf32>
    %139 = vector.extract_strided_slice %136 {offsets = [0, 64], sizes = [8, 32], strides = [1, 1]} : vector<8x128xf32> to vector<8x32xf32>
    %140 = vector.extract_strided_slice %135 {offsets = [0, 96], sizes = [8, 32], strides = [1, 1]} : vector<8x128xf32> to vector<8x32xf32>
    %141 = arith.mulf %138, %120 : vector<8x32xf32>
    %142 = arith.mulf %137, %139 : vector<8x32xf32>
    %143 = arith.addf %141, %142 : vector<8x32xf32>
    %144 = math.tanh %143 : vector<8x32xf32>
    %145 = arith.mulf %140, %144 : vector<8x32xf32>
    %146 = arith.index_cast %126 : i32 to index
    %c0_39 = arith.constant 0 : index
    %147 = vector.load %arg10[%146, %c0_39] : memref<64x32xf32, #tpu.memory_space<vmem>>, vector<8x32xf32>
    tpu.vector_store %arg10[%146, %c0_39], %145 {strides = array<i32>} : memref<64x32xf32, #tpu.memory_space<vmem>>, vector<8x32xf32>,
    %c6_i32 = arith.constant 6 : i32
    %c8_i32_40 = arith.constant 8 : i32
    %148 = arith.muli %c6_i32, %c8_i32_40 : i32
    %149 = tpu.assume_multiple %148, 8 : i32
    %150 = arith.index_cast %149 : i32 to index
    %c0_41 = arith.constant 0 : index
    %151 = vector.load %arg11[%150, %c0_41] : memref<64x128xf32, #tpu.memory_space<vmem>>, vector<8x128xf32>
    %cst_42 = arith.constant dense<0.000000e+00> : vector<8x128xf32>
    %152 = tpu.matmul %145, %0, %cst_42 {dimension_numbers = #tpu.dot_dimension_numbers<[1], [0], [0], [1], [0, 0, 1, 1], [], []>} : vector<8x32xf32>, vector<32x128xf32>, vector<8x128xf32> -> vector<8x128xf32>
    %153 = arith.addf %151, %152 : vector<8x128xf32>
    %154 = arith.negf %153 : vector<8x128xf32>
    %155 = math.exp %154 : vector<8x128xf32>
    %cst_43 = arith.constant 1.000000e+00 : f32
    %156 = vector.broadcast %cst_43 : f32 to vector<8x128xf32>
    %157 = arith.addf %156, %155 : vector<8x128xf32>
    %158 = arith.divf %156, %157 : vector<8x128xf32>
    %159 = math.tanh %153 : vector<8x128xf32>
    %160 = vector.extract_strided_slice %158 {offsets = [0, 0], sizes = [8, 32], strides = [1, 1]} : vector<8x128xf32> to vector<8x32xf32>
    %161 = vector.extract_strided_slice %158 {offsets = [0, 32], sizes = [8, 32], strides = [1, 1]} : vector<8x128xf32> to vector<8x32xf32>
    %162 = vector.extract_strided_slice %159 {offsets = [0, 64], sizes = [8, 32], strides = [1, 1]} : vector<8x128xf32> to vector<8x32xf32>
    %163 = vector.extract_strided_slice %158 {offsets = [0, 96], sizes = [8, 32], strides = [1, 1]} : vector<8x128xf32> to vector<8x32xf32>
    %164 = arith.mulf %161, %143 : vector<8x32xf32>
    %165 = arith.mulf %160, %162 : vector<8x32xf32>
    %166 = arith.addf %164, %165 : vector<8x32xf32>
    %167 = math.tanh %166 : vector<8x32xf32>
    %168 = arith.mulf %163, %167 : vector<8x32xf32>
    %169 = arith.index_cast %149 : i32 to index
    %c0_44 = arith.constant 0 : index
    %170 = vector.load %arg10[%169, %c0_44] : memref<64x32xf32, #tpu.memory_space<vmem>>, vector<8x32xf32>
    tpu.vector_store %arg10[%169, %c0_44], %168 {strides = array<i32>} : memref<64x32xf32, #tpu.memory_space<vmem>>, vector<8x32xf32>,
    %c7_i32 = arith.constant 7 : i32
    %c8_i32_45 = arith.constant 8 : i32
    %171 = arith.muli %c7_i32, %c8_i32_45 : i32
    %172 = tpu.assume_multiple %171, 8 : i32
    %173 = arith.index_cast %172 : i32 to index
    %c0_46 = arith.constant 0 : index
    %174 = vector.load %arg11[%173, %c0_46] : memref<64x128xf32, #tpu.memory_space<vmem>>, vector<8x128xf32>
    %cst_47 = arith.constant dense<0.000000e+00> : vector<8x128xf32>
    %175 = tpu.matmul %168, %0, %cst_47 {dimension_numbers = #tpu.dot_dimension_numbers<[1], [0], [0], [1], [0, 0, 1, 1], [], []>} : vector<8x32xf32>, vector<32x128xf32>, vector<8x128xf32> -> vector<8x128xf32>
    %176 = arith.addf %174, %175 : vector<8x128xf32>
    %177 = arith.negf %176 : vector<8x128xf32>
    %178 = math.exp %177 : vector<8x128xf32>
    %cst_48 = arith.constant 1.000000e+00 : f32
    %179 = vector.broadcast %cst_48 : f32 to vector<8x128xf32>
    %180 = arith.addf %179, %178 : vector<8x128xf32>
    %181 = arith.divf %179, %180 : vector<8x128xf32>
    %182 = math.tanh %176 : vector<8x128xf32>
    %183 = vector.extract_strided_slice %181 {offsets = [0, 0], sizes = [8, 32], strides = [1, 1]} : vector<8x128xf32> to vector<8x32xf32>
    %184 = vector.extract_strided_slice %181 {offsets = [0, 32], sizes = [8, 32], strides = [1, 1]} : vector<8x128xf32> to vector<8x32xf32>
    %185 = vector.extract_strided_slice %182 {offsets = [0, 64], sizes = [8, 32], strides = [1, 1]} : vector<8x128xf32> to vector<8x32xf32>
    %186 = vector.extract_strided_slice %181 {offsets = [0, 96], sizes = [8, 32], strides = [1, 1]} : vector<8x128xf32> to vector<8x32xf32>
    %187 = arith.mulf %184, %166 : vector<8x32xf32>
    %188 = arith.mulf %183, %185 : vector<8x32xf32>
    %189 = arith.addf %187, %188 : vector<8x32xf32>
    %190 = math.tanh %189 : vector<8x32xf32>
    %191 = arith.mulf %186, %190 : vector<8x32xf32>
    %192 = arith.index_cast %172 : i32 to index
    %c0_49 = arith.constant 0 : index
    %193 = vector.load %arg10[%192, %c0_49] : memref<64x32xf32, #tpu.memory_space<vmem>>, vector<8x32xf32>
    tpu.vector_store %arg10[%192, %c0_49], %191 {strides = array<i32>} : memref<64x32xf32, #tpu.memory_space<vmem>>, vector<8x32xf32>,
    %c8_i32_50 = arith.constant 8 : i32
    %c0_51 = arith.constant 0 : index
    %c0_52 = arith.constant 0 : index
    %194 = vector.load %arg5[%c0_51, %c0_52] : memref<32x128xf32, #tpu.memory_space<vmem>>, vector<32x128xf32>
    %c0_53 = arith.constant 0 : index
    %c0_54 = arith.constant 0 : index
    %195 = vector.load %arg10[%c0_53, %c0_54] : memref<64x32xf32, #tpu.memory_space<vmem>>, vector<64x32xf32>
    %c0_55 = arith.constant 0 : index
    %c0_56 = arith.constant 0 : index
    %196 = vector.load %arg4[%c0_55, %c0_56] : memref<32x128xf32, #tpu.memory_space<vmem>>, vector<32x128xf32>
    %cst_57 = arith.constant dense<0.000000e+00> : vector<64x128xf32>
    %197 = tpu.matmul %195, %196, %cst_57 {dimension_numbers = #tpu.dot_dimension_numbers<[1], [0], [0], [1], [0, 0, 1, 1], [], []>} : vector<64x32xf32>, vector<32x128xf32>, vector<64x128xf32> -> vector<64x128xf32>
    %c0_58 = arith.constant 0 : index
    %c0_59 = arith.constant 0 : index
    %198 = vector.load %arg6[%c0_58, %c0_59] : memref<1x128xf32, #tpu.memory_space<vmem>>, vector<1x128xf32>
    %199 = vector.broadcast %198 : vector<1x128xf32> to vector<64x128xf32>
    %200 = arith.addf %197, %199 : vector<64x128xf32>
    %c0_60 = arith.constant 0 : index
    %c0_61 = arith.constant 0 : index
    %201 = vector.load %arg11[%c0_60, %c0_61] : memref<64x128xf32, #tpu.memory_space<vmem>>, vector<64x128xf32>
    tpu.vector_store %arg11[%c0_60, %c0_61], %200 {strides = array<i32>} : memref<64x128xf32, #tpu.memory_space<vmem>>, vector<64x128xf32>,
    %cst_62 = arith.constant 0.000000e+00 : f32
    %202 = vector.broadcast %cst_62 : f32 to vector<8x32xf32>
    %cst_63 = arith.constant 0.000000e+00 : f32
    %203 = vector.broadcast %cst_63 : f32 to vector<8x32xf32>
    %c0_i32_64 = arith.constant 0 : i32
    %c8_i32_65 = arith.constant 8 : i32
    %204 = arith.muli %c0_i32_64, %c8_i32_65 : i32
    %205 = tpu.assume_multiple %204, 8 : i32
    %206 = arith.index_cast %205 : i32 to index
    %c0_66 = arith.constant 0 : index
    %207 = vector.load %arg11[%206, %c0_66] : memref<64x128xf32, #tpu.memory_space<vmem>>, vector<8x128xf32>
    %cst_67 = arith.constant dense<0.000000e+00> : vector<8x128xf32>
    %208 = tpu.matmul %202, %194, %cst_67 {dimension_numbers = #tpu.dot_dimension_numbers<[1], [0], [0], [1], [0, 0, 1, 1], [], []>} : vector<8x32xf32>, vector<32x128xf32>, vector<8x128xf32> -> vector<8x128xf32>
    %209 = arith.addf %207, %208 : vector<8x128xf32>
    %210 = arith.negf %209 : vector<8x128xf32>
    %211 = math.exp %210 : vector<8x128xf32>
    %cst_68 = arith.constant 1.000000e+00 : f32
    %212 = vector.broadcast %cst_68 : f32 to vector<8x128xf32>
    %213 = arith.addf %212, %211 : vector<8x128xf32>
    %214 = arith.divf %212, %213 : vector<8x128xf32>
    %215 = math.tanh %209 : vector<8x128xf32>
    %216 = vector.extract_strided_slice %214 {offsets = [0, 0], sizes = [8, 32], strides = [1, 1]} : vector<8x128xf32> to vector<8x32xf32>
    %217 = vector.extract_strided_slice %214 {offsets = [0, 32], sizes = [8, 32], strides = [1, 1]} : vector<8x128xf32> to vector<8x32xf32>
    %218 = vector.extract_strided_slice %215 {offsets = [0, 64], sizes = [8, 32], strides = [1, 1]} : vector<8x128xf32> to vector<8x32xf32>
    %219 = vector.extract_strided_slice %214 {offsets = [0, 96], sizes = [8, 32], strides = [1, 1]} : vector<8x128xf32> to vector<8x32xf32>
    %220 = arith.mulf %217, %203 : vector<8x32xf32>
    %221 = arith.mulf %216, %218 : vector<8x32xf32>
    %222 = arith.addf %220, %221 : vector<8x32xf32>
    %223 = math.tanh %222 : vector<8x32xf32>
    %224 = arith.mulf %219, %223 : vector<8x32xf32>
    %225 = arith.index_cast %205 : i32 to index
    %c0_69 = arith.constant 0 : index
    %226 = vector.load %arg10[%225, %c0_69] : memref<64x32xf32, #tpu.memory_space<vmem>>, vector<8x32xf32>
    tpu.vector_store %arg10[%225, %c0_69], %224 {strides = array<i32>} : memref<64x32xf32, #tpu.memory_space<vmem>>, vector<8x32xf32>,
    %c1_i32_70 = arith.constant 1 : i32
    %c8_i32_71 = arith.constant 8 : i32
    %227 = arith.muli %c1_i32_70, %c8_i32_71 : i32
    %228 = tpu.assume_multiple %227, 8 : i32
    %229 = arith.index_cast %228 : i32 to index
    %c0_72 = arith.constant 0 : index
    %230 = vector.load %arg11[%229, %c0_72] : memref<64x128xf32, #tpu.memory_space<vmem>>, vector<8x128xf32>
    %cst_73 = arith.constant dense<0.000000e+00> : vector<8x128xf32>
    %231 = tpu.matmul %224, %194, %cst_73 {dimension_numbers = #tpu.dot_dimension_numbers<[1], [0], [0], [1], [0, 0, 1, 1], [], []>} : vector<8x32xf32>, vector<32x128xf32>, vector<8x128xf32> -> vector<8x128xf32>
    %232 = arith.addf %230, %231 : vector<8x128xf32>
    %233 = arith.negf %232 : vector<8x128xf32>
    %234 = math.exp %233 : vector<8x128xf32>
    %cst_74 = arith.constant 1.000000e+00 : f32
    %235 = vector.broadcast %cst_74 : f32 to vector<8x128xf32>
    %236 = arith.addf %235, %234 : vector<8x128xf32>
    %237 = arith.divf %235, %236 : vector<8x128xf32>
    %238 = math.tanh %232 : vector<8x128xf32>
    %239 = vector.extract_strided_slice %237 {offsets = [0, 0], sizes = [8, 32], strides = [1, 1]} : vector<8x128xf32> to vector<8x32xf32>
    %240 = vector.extract_strided_slice %237 {offsets = [0, 32], sizes = [8, 32], strides = [1, 1]} : vector<8x128xf32> to vector<8x32xf32>
    %241 = vector.extract_strided_slice %238 {offsets = [0, 64], sizes = [8, 32], strides = [1, 1]} : vector<8x128xf32> to vector<8x32xf32>
    %242 = vector.extract_strided_slice %237 {offsets = [0, 96], sizes = [8, 32], strides = [1, 1]} : vector<8x128xf32> to vector<8x32xf32>
    %243 = arith.mulf %240, %222 : vector<8x32xf32>
    %244 = arith.mulf %239, %241 : vector<8x32xf32>
    %245 = arith.addf %243, %244 : vector<8x32xf32>
    %246 = math.tanh %245 : vector<8x32xf32>
    %247 = arith.mulf %242, %246 : vector<8x32xf32>
    %248 = arith.index_cast %228 : i32 to index
    %c0_75 = arith.constant 0 : index
    %249 = vector.load %arg10[%248, %c0_75] : memref<64x32xf32, #tpu.memory_space<vmem>>, vector<8x32xf32>
    tpu.vector_store %arg10[%248, %c0_75], %247 {strides = array<i32>} : memref<64x32xf32, #tpu.memory_space<vmem>>, vector<8x32xf32>,
    %c2_i32_76 = arith.constant 2 : i32
    %c8_i32_77 = arith.constant 8 : i32
    %250 = arith.muli %c2_i32_76, %c8_i32_77 : i32
    %251 = tpu.assume_multiple %250, 8 : i32
    %252 = arith.index_cast %251 : i32 to index
    %c0_78 = arith.constant 0 : index
    %253 = vector.load %arg11[%252, %c0_78] : memref<64x128xf32, #tpu.memory_space<vmem>>, vector<8x128xf32>
    %cst_79 = arith.constant dense<0.000000e+00> : vector<8x128xf32>
    %254 = tpu.matmul %247, %194, %cst_79 {dimension_numbers = #tpu.dot_dimension_numbers<[1], [0], [0], [1], [0, 0, 1, 1], [], []>} : vector<8x32xf32>, vector<32x128xf32>, vector<8x128xf32> -> vector<8x128xf32>
    %255 = arith.addf %253, %254 : vector<8x128xf32>
    %256 = arith.negf %255 : vector<8x128xf32>
    %257 = math.exp %256 : vector<8x128xf32>
    %cst_80 = arith.constant 1.000000e+00 : f32
    %258 = vector.broadcast %cst_80 : f32 to vector<8x128xf32>
    %259 = arith.addf %258, %257 : vector<8x128xf32>
    %260 = arith.divf %258, %259 : vector<8x128xf32>
    %261 = math.tanh %255 : vector<8x128xf32>
    %262 = vector.extract_strided_slice %260 {offsets = [0, 0], sizes = [8, 32], strides = [1, 1]} : vector<8x128xf32> to vector<8x32xf32>
    %263 = vector.extract_strided_slice %260 {offsets = [0, 32], sizes = [8, 32], strides = [1, 1]} : vector<8x128xf32> to vector<8x32xf32>
    %264 = vector.extract_strided_slice %261 {offsets = [0, 64], sizes = [8, 32], strides = [1, 1]} : vector<8x128xf32> to vector<8x32xf32>
    %265 = vector.extract_strided_slice %260 {offsets = [0, 96], sizes = [8, 32], strides = [1, 1]} : vector<8x128xf32> to vector<8x32xf32>
    %266 = arith.mulf %263, %245 : vector<8x32xf32>
    %267 = arith.mulf %262, %264 : vector<8x32xf32>
    %268 = arith.addf %266, %267 : vector<8x32xf32>
    %269 = math.tanh %268 : vector<8x32xf32>
    %270 = arith.mulf %265, %269 : vector<8x32xf32>
    %271 = arith.index_cast %251 : i32 to index
    %c0_81 = arith.constant 0 : index
    %272 = vector.load %arg10[%271, %c0_81] : memref<64x32xf32, #tpu.memory_space<vmem>>, vector<8x32xf32>
    tpu.vector_store %arg10[%271, %c0_81], %270 {strides = array<i32>} : memref<64x32xf32, #tpu.memory_space<vmem>>, vector<8x32xf32>,
    %c3_i32_82 = arith.constant 3 : i32
    %c8_i32_83 = arith.constant 8 : i32
    %273 = arith.muli %c3_i32_82, %c8_i32_83 : i32
    %274 = tpu.assume_multiple %273, 8 : i32
    %275 = arith.index_cast %274 : i32 to index
    %c0_84 = arith.constant 0 : index
    %276 = vector.load %arg11[%275, %c0_84] : memref<64x128xf32, #tpu.memory_space<vmem>>, vector<8x128xf32>
    %cst_85 = arith.constant dense<0.000000e+00> : vector<8x128xf32>
    %277 = tpu.matmul %270, %194, %cst_85 {dimension_numbers = #tpu.dot_dimension_numbers<[1], [0], [0], [1], [0, 0, 1, 1], [], []>} : vector<8x32xf32>, vector<32x128xf32>, vector<8x128xf32> -> vector<8x128xf32>
    %278 = arith.addf %276, %277 : vector<8x128xf32>
    %279 = arith.negf %278 : vector<8x128xf32>
    %280 = math.exp %279 : vector<8x128xf32>
    %cst_86 = arith.constant 1.000000e+00 : f32
    %281 = vector.broadcast %cst_86 : f32 to vector<8x128xf32>
    %282 = arith.addf %281, %280 : vector<8x128xf32>
    %283 = arith.divf %281, %282 : vector<8x128xf32>
    %284 = math.tanh %278 : vector<8x128xf32>
    %285 = vector.extract_strided_slice %283 {offsets = [0, 0], sizes = [8, 32], strides = [1, 1]} : vector<8x128xf32> to vector<8x32xf32>
    %286 = vector.extract_strided_slice %283 {offsets = [0, 32], sizes = [8, 32], strides = [1, 1]} : vector<8x128xf32> to vector<8x32xf32>
    %287 = vector.extract_strided_slice %284 {offsets = [0, 64], sizes = [8, 32], strides = [1, 1]} : vector<8x128xf32> to vector<8x32xf32>
    %288 = vector.extract_strided_slice %283 {offsets = [0, 96], sizes = [8, 32], strides = [1, 1]} : vector<8x128xf32> to vector<8x32xf32>
    %289 = arith.mulf %286, %268 : vector<8x32xf32>
    %290 = arith.mulf %285, %287 : vector<8x32xf32>
    %291 = arith.addf %289, %290 : vector<8x32xf32>
    %292 = math.tanh %291 : vector<8x32xf32>
    %293 = arith.mulf %288, %292 : vector<8x32xf32>
    %294 = arith.index_cast %274 : i32 to index
    %c0_87 = arith.constant 0 : index
    %295 = vector.load %arg10[%294, %c0_87] : memref<64x32xf32, #tpu.memory_space<vmem>>, vector<8x32xf32>
    tpu.vector_store %arg10[%294, %c0_87], %293 {strides = array<i32>} : memref<64x32xf32, #tpu.memory_space<vmem>>, vector<8x32xf32>,
    %c4_i32_88 = arith.constant 4 : i32
    %c8_i32_89 = arith.constant 8 : i32
    %296 = arith.muli %c4_i32_88, %c8_i32_89 : i32
    %297 = tpu.assume_multiple %296, 8 : i32
    %298 = arith.index_cast %297 : i32 to index
    %c0_90 = arith.constant 0 : index
    %299 = vector.load %arg11[%298, %c0_90] : memref<64x128xf32, #tpu.memory_space<vmem>>, vector<8x128xf32>
    %cst_91 = arith.constant dense<0.000000e+00> : vector<8x128xf32>
    %300 = tpu.matmul %293, %194, %cst_91 {dimension_numbers = #tpu.dot_dimension_numbers<[1], [0], [0], [1], [0, 0, 1, 1], [], []>} : vector<8x32xf32>, vector<32x128xf32>, vector<8x128xf32> -> vector<8x128xf32>
    %301 = arith.addf %299, %300 : vector<8x128xf32>
    %302 = arith.negf %301 : vector<8x128xf32>
    %303 = math.exp %302 : vector<8x128xf32>
    %cst_92 = arith.constant 1.000000e+00 : f32
    %304 = vector.broadcast %cst_92 : f32 to vector<8x128xf32>
    %305 = arith.addf %304, %303 : vector<8x128xf32>
    %306 = arith.divf %304, %305 : vector<8x128xf32>
    %307 = math.tanh %301 : vector<8x128xf32>
    %308 = vector.extract_strided_slice %306 {offsets = [0, 0], sizes = [8, 32], strides = [1, 1]} : vector<8x128xf32> to vector<8x32xf32>
    %309 = vector.extract_strided_slice %306 {offsets = [0, 32], sizes = [8, 32], strides = [1, 1]} : vector<8x128xf32> to vector<8x32xf32>
    %310 = vector.extract_strided_slice %307 {offsets = [0, 64], sizes = [8, 32], strides = [1, 1]} : vector<8x128xf32> to vector<8x32xf32>
    %311 = vector.extract_strided_slice %306 {offsets = [0, 96], sizes = [8, 32], strides = [1, 1]} : vector<8x128xf32> to vector<8x32xf32>
    %312 = arith.mulf %309, %291 : vector<8x32xf32>
    %313 = arith.mulf %308, %310 : vector<8x32xf32>
    %314 = arith.addf %312, %313 : vector<8x32xf32>
    %315 = math.tanh %314 : vector<8x32xf32>
    %316 = arith.mulf %311, %315 : vector<8x32xf32>
    %317 = arith.index_cast %297 : i32 to index
    %c0_93 = arith.constant 0 : index
    %318 = vector.load %arg10[%317, %c0_93] : memref<64x32xf32, #tpu.memory_space<vmem>>, vector<8x32xf32>
    tpu.vector_store %arg10[%317, %c0_93], %316 {strides = array<i32>} : memref<64x32xf32, #tpu.memory_space<vmem>>, vector<8x32xf32>,
    %c5_i32_94 = arith.constant 5 : i32
    %c8_i32_95 = arith.constant 8 : i32
    %319 = arith.muli %c5_i32_94, %c8_i32_95 : i32
    %320 = tpu.assume_multiple %319, 8 : i32
    %321 = arith.index_cast %320 : i32 to index
    %c0_96 = arith.constant 0 : index
    %322 = vector.load %arg11[%321, %c0_96] : memref<64x128xf32, #tpu.memory_space<vmem>>, vector<8x128xf32>
    %cst_97 = arith.constant dense<0.000000e+00> : vector<8x128xf32>
    %323 = tpu.matmul %316, %194, %cst_97 {dimension_numbers = #tpu.dot_dimension_numbers<[1], [0], [0], [1], [0, 0, 1, 1], [], []>} : vector<8x32xf32>, vector<32x128xf32>, vector<8x128xf32> -> vector<8x128xf32>
    %324 = arith.addf %322, %323 : vector<8x128xf32>
    %325 = arith.negf %324 : vector<8x128xf32>
    %326 = math.exp %325 : vector<8x128xf32>
    %cst_98 = arith.constant 1.000000e+00 : f32
    %327 = vector.broadcast %cst_98 : f32 to vector<8x128xf32>
    %328 = arith.addf %327, %326 : vector<8x128xf32>
    %329 = arith.divf %327, %328 : vector<8x128xf32>
    %330 = math.tanh %324 : vector<8x128xf32>
    %331 = vector.extract_strided_slice %329 {offsets = [0, 0], sizes = [8, 32], strides = [1, 1]} : vector<8x128xf32> to vector<8x32xf32>
    %332 = vector.extract_strided_slice %329 {offsets = [0, 32], sizes = [8, 32], strides = [1, 1]} : vector<8x128xf32> to vector<8x32xf32>
    %333 = vector.extract_strided_slice %330 {offsets = [0, 64], sizes = [8, 32], strides = [1, 1]} : vector<8x128xf32> to vector<8x32xf32>
    %334 = vector.extract_strided_slice %329 {offsets = [0, 96], sizes = [8, 32], strides = [1, 1]} : vector<8x128xf32> to vector<8x32xf32>
    %335 = arith.mulf %332, %314 : vector<8x32xf32>
    %336 = arith.mulf %331, %333 : vector<8x32xf32>
    %337 = arith.addf %335, %336 : vector<8x32xf32>
    %338 = math.tanh %337 : vector<8x32xf32>
    %339 = arith.mulf %334, %338 : vector<8x32xf32>
    %340 = arith.index_cast %320 : i32 to index
    %c0_99 = arith.constant 0 : index
    %341 = vector.load %arg10[%340, %c0_99] : memref<64x32xf32, #tpu.memory_space<vmem>>, vector<8x32xf32>
    tpu.vector_store %arg10[%340, %c0_99], %339 {strides = array<i32>} : memref<64x32xf32, #tpu.memory_space<vmem>>, vector<8x32xf32>,
    %c6_i32_100 = arith.constant 6 : i32
    %c8_i32_101 = arith.constant 8 : i32
    %342 = arith.muli %c6_i32_100, %c8_i32_101 : i32
    %343 = tpu.assume_multiple %342, 8 : i32
    %344 = arith.index_cast %343 : i32 to index
    %c0_102 = arith.constant 0 : index
    %345 = vector.load %arg11[%344, %c0_102] : memref<64x128xf32, #tpu.memory_space<vmem>>, vector<8x128xf32>
    %cst_103 = arith.constant dense<0.000000e+00> : vector<8x128xf32>
    %346 = tpu.matmul %339, %194, %cst_103 {dimension_numbers = #tpu.dot_dimension_numbers<[1], [0], [0], [1], [0, 0, 1, 1], [], []>} : vector<8x32xf32>, vector<32x128xf32>, vector<8x128xf32> -> vector<8x128xf32>
    %347 = arith.addf %345, %346 : vector<8x128xf32>
    %348 = arith.negf %347 : vector<8x128xf32>
    %349 = math.exp %348 : vector<8x128xf32>
    %cst_104 = arith.constant 1.000000e+00 : f32
    %350 = vector.broadcast %cst_104 : f32 to vector<8x128xf32>
    %351 = arith.addf %350, %349 : vector<8x128xf32>
    %352 = arith.divf %350, %351 : vector<8x128xf32>
    %353 = math.tanh %347 : vector<8x128xf32>
    %354 = vector.extract_strided_slice %352 {offsets = [0, 0], sizes = [8, 32], strides = [1, 1]} : vector<8x128xf32> to vector<8x32xf32>
    %355 = vector.extract_strided_slice %352 {offsets = [0, 32], sizes = [8, 32], strides = [1, 1]} : vector<8x128xf32> to vector<8x32xf32>
    %356 = vector.extract_strided_slice %353 {offsets = [0, 64], sizes = [8, 32], strides = [1, 1]} : vector<8x128xf32> to vector<8x32xf32>
    %357 = vector.extract_strided_slice %352 {offsets = [0, 96], sizes = [8, 32], strides = [1, 1]} : vector<8x128xf32> to vector<8x32xf32>
    %358 = arith.mulf %355, %337 : vector<8x32xf32>
    %359 = arith.mulf %354, %356 : vector<8x32xf32>
    %360 = arith.addf %358, %359 : vector<8x32xf32>
    %361 = math.tanh %360 : vector<8x32xf32>
    %362 = arith.mulf %357, %361 : vector<8x32xf32>
    %363 = arith.index_cast %343 : i32 to index
    %c0_105 = arith.constant 0 : index
    %364 = vector.load %arg10[%363, %c0_105] : memref<64x32xf32, #tpu.memory_space<vmem>>, vector<8x32xf32>
    tpu.vector_store %arg10[%363, %c0_105], %362 {strides = array<i32>} : memref<64x32xf32, #tpu.memory_space<vmem>>, vector<8x32xf32>,
    %c7_i32_106 = arith.constant 7 : i32
    %c8_i32_107 = arith.constant 8 : i32
    %365 = arith.muli %c7_i32_106, %c8_i32_107 : i32
    %366 = tpu.assume_multiple %365, 8 : i32
    %367 = arith.index_cast %366 : i32 to index
    %c0_108 = arith.constant 0 : index
    %368 = vector.load %arg11[%367, %c0_108] : memref<64x128xf32, #tpu.memory_space<vmem>>, vector<8x128xf32>
    %cst_109 = arith.constant dense<0.000000e+00> : vector<8x128xf32>
    %369 = tpu.matmul %362, %194, %cst_109 {dimension_numbers = #tpu.dot_dimension_numbers<[1], [0], [0], [1], [0, 0, 1, 1], [], []>} : vector<8x32xf32>, vector<32x128xf32>, vector<8x128xf32> -> vector<8x128xf32>
    %370 = arith.addf %368, %369 : vector<8x128xf32>
    %371 = arith.negf %370 : vector<8x128xf32>
    %372 = math.exp %371 : vector<8x128xf32>
    %cst_110 = arith.constant 1.000000e+00 : f32
    %373 = vector.broadcast %cst_110 : f32 to vector<8x128xf32>
    %374 = arith.addf %373, %372 : vector<8x128xf32>
    %375 = arith.divf %373, %374 : vector<8x128xf32>
    %376 = math.tanh %370 : vector<8x128xf32>
    %377 = vector.extract_strided_slice %375 {offsets = [0, 0], sizes = [8, 32], strides = [1, 1]} : vector<8x128xf32> to vector<8x32xf32>
    %378 = vector.extract_strided_slice %375 {offsets = [0, 32], sizes = [8, 32], strides = [1, 1]} : vector<8x128xf32> to vector<8x32xf32>
    %379 = vector.extract_strided_slice %376 {offsets = [0, 64], sizes = [8, 32], strides = [1, 1]} : vector<8x128xf32> to vector<8x32xf32>
    %380 = vector.extract_strided_slice %375 {offsets = [0, 96], sizes = [8, 32], strides = [1, 1]} : vector<8x128xf32> to vector<8x32xf32>
    %381 = arith.mulf %378, %360 : vector<8x32xf32>
    %382 = arith.mulf %377, %379 : vector<8x32xf32>
    %383 = arith.addf %381, %382 : vector<8x32xf32>
    %384 = math.tanh %383 : vector<8x32xf32>
    %385 = arith.mulf %380, %384 : vector<8x32xf32>
    %386 = arith.index_cast %366 : i32 to index
    %c0_111 = arith.constant 0 : index
    %387 = vector.load %arg10[%386, %c0_111] : memref<64x32xf32, #tpu.memory_space<vmem>>, vector<8x32xf32>
    tpu.vector_store %arg10[%386, %c0_111], %385 {strides = array<i32>} : memref<64x32xf32, #tpu.memory_space<vmem>>, vector<8x32xf32>,
    %c8_i32_112 = arith.constant 8 : i32
    %c0_113 = arith.constant 0 : index
    %c0_114 = arith.constant 0 : index
    %388 = vector.load %arg10[%c0_113, %c0_114] : memref<64x32xf32, #tpu.memory_space<vmem>>, vector<64x32xf32>
    %c0_115 = arith.constant 0 : index
    %c0_116 = arith.constant 0 : index
    %389 = vector.load %arg7[%c0_115, %c0_116] : memref<32x2xf32, #tpu.memory_space<vmem>>, vector<32x2xf32>
    %cst_117 = arith.constant dense<0.000000e+00> : vector<64x2xf32>
    %390 = tpu.matmul %388, %389, %cst_117 {dimension_numbers = #tpu.dot_dimension_numbers<[1], [0], [0], [1], [0, 0, 1, 1], [], []>} : vector<64x32xf32>, vector<32x2xf32>, vector<64x2xf32> -> vector<64x2xf32>
    %c0_118 = arith.constant 0 : index
    %c0_119 = arith.constant 0 : index
    %391 = vector.load %arg8[%c0_118, %c0_119] : memref<1x2xf32, #tpu.memory_space<vmem>>, vector<1x2xf32>
    %392 = vector.broadcast %391 : vector<1x2xf32> to vector<64x2xf32>
    %393 = arith.addf %390, %392 : vector<64x2xf32>
    %394 = tpu.iota {dimensions = array<i32: 1>} : vector<64x2xi32>
    %c0_i32_120 = arith.constant 0 : i32
    %395 = vector.broadcast %c0_i32_120 : i32 to vector<64x2xi32>
    %396 = arith.cmpi eq, %394, %395 : vector<64x2xi32>
    %397 = math.tanh %393 : vector<64x2xf32>
    %398 = arith.select %396, %393, %397 : vector<64x2xi1>, vector<64x2xf32>
    %c0_121 = arith.constant 0 : index
    %c0_122 = arith.constant 0 : index
    %399 = vector.load %arg9[%c0_121, %c0_122] : memref<64x2xf32, #tpu.memory_space<vmem>>, vector<64x2xf32>
    tpu.vector_store %arg9[%c0_121, %c0_122], %398 {strides = array<i32>} : memref<64x2xf32, #tpu.memory_space<vmem>>, vector<64x2xf32>,
    return
  }
}

</mosaic_0001>

<bundles_post_ra>
// kernel: tpu_custom_call.1
= control target key start
LH: loop header
LB: loop body
LE: loop exit
PB: predicated region body
PF: predicated region fallthrough
CT: control target
= control target key end

     0   :  { %vm52_vm0 = vcmask 64512   ;;  %v2855_v8 = vmov 0.0|0.0   ;;  %vm2856_vm1 = vmmov 0   ;;  %v2857_v14 = vmov 0.0   ;;  %s2858_s10 = smov 64   ;;  %s3340_s1 = inlined_call_operand.vmem [shape: f32[8,128], index: 1, kind: input, shape index: {}]   ;;  %s3341_s0 = inlined_call_operand.vmem [shape: f32[64,8], index: 0, kind: input, shape index: {}]   ;;  %s3342_s2 = inlined_call_operand.vmem [shape: f32[32,128], index: 2, kind: input, shape index: {}]   ;;  %s3343_s3 = inlined_call_operand.vmem [shape: f32[1,128], index: 3, kind: input, shape index: {}]   ;;  %s3344_s4 = inlined_call_operand.vmem [shape: f32[32,128], index: 4, kind: input, shape index: {}]   ;;  %s3345_s5 = inlined_call_operand.vmem [shape: f32[32,128], index: 5, kind: input, shape index: {}]   ;;  %s3346_s6 = inlined_call_operand.vmem [shape: f32[1,128], index: 6, kind: input, shape index: {}]   ;;  %s3347_s7 = inlined_call_operand.vmem [shape: f32[32,2], index: 7, kind: input, shape index: {}]   ;;  %s3348_s8 = inlined_call_operand.vmem [shape: f32[1,2], index: 8, kind: input, shape index: {}]   ;;  %s3349_s9 = inlined_call_operand.vmem [shape: f32[64,2], index: 9, kind: output, shape index: {}]  }
   0x1   :  { %v44_v0 = vld [vmem:[%s3340_s1] sm:$0xff]  ;;  %v41_v2 = vld [vmem:[%s3341_s0 + $0x28] sm:$0xff]  ;;  %v42_v5 = vld [vmem:[%s3341_s0 + $0x30] sm:$0xff]  ;;  %vm191_vm2 = vcmask 261120   ;;  %vm2179_vm4 = vcmask 15360  }
   0x2   :  { %v40_v1 = vld [vmem:[%s3341_s0 + $0x20] sm:$0xff]  ;;  %2704 = vmatprep.subr.mxu1 %v44_v0  ;;  %v33_v4 = vld [vmem:[%s3342_s2 + $0x8] sm:$0xff]  ;;  %2362 = vmatprep.subr.mxu0 %v44_v0  ;;  %v34_v10 = vld [vmem:[%s3342_s2 + $0x10] sm:$0xff] }
   0x3   :  { %2370 = vmatprep.mubr.msk.f32.mxu1 %vm52_vm0, %v40_v1  ;;  %v32_v3 = vld [vmem:[%s3342_s2] sm:$0xff]  ;;  %2705 = vmatpush3.msra.mxu1 %v44_v0  ;;  %v37_v9 = vld [vmem:[%s3341_s0 + $0x8] sm:$0xff]  ;;  %v35_v11 = vld [vmem:[%s3342_s2 + $0x18] sm:$0xff] }
   0x4   :  { %v2929_v6 = vpack.c.bf16 %v33_v4, %v32_v3  ;;  %v36_v7 = vld [vmem:[%s3341_s0] sm:$0xff]  ;;  %2371 = vmatmul.mubr.msk.f32.vlgmr.msra.gmra.mrb[0].mxu1 %vm52_vm0, %v41_v2  ;;  %2592 = vmatprep.subr.bf16.mxu1 %v2855_v8  ;;  %v43_v12 = vld [vmem:[%s3341_s0 + $0x38] sm:$0xff]  ;;  %v2950_v13 = vpack.c.bf16 %v35_v11, %v34_v10  ;;  %v38_v54 = vld [vmem:[%s3341_s0 + $0x10] sm:$0xff] }
   0x5   :  { %2373 = vmatprep.mubr.msk.f32.mxu1 %vm52_vm0, %v42_v5  ;;  %2363 = vmatpush3.msra.mxu0 %v44_v0  ;;  %v2979_v18 = vld [vmem:[%s3343_s3] ss:$0 sm:$0xff]  ;;  %s2859_s3 = smov 32   ;;  %v39_v55 = vld [vmem:[%s3341_s0 + $0x18] sm:$0xff] }
   0x6   :  { %2594 = vmatpush3.bf16.msra.mxu1 %v2929_v6  ;;  %2364 = vmatprep.mubr.msk.f32.mxu0 %vm52_vm0, %v36_v7 }
   0x7   :  { %2595 = vmatprep.subr.bf16.mxu1 %v2855_v8  ;;  %2365 = vmatmul.mubr.msk.f32.vlgmr.msra.gmra.mrb[0].mxu0 %vm52_vm0, %v37_v9 }
   0x8   :  { %2374 = vmatmul.mubr.msk.f32.gmra.mrb[2].mxu1 %vm52_vm0, %v43_v12  ;;  %2604 = vmatprep.subr.bf16.mxu0 %v2855_v8 }
   0x9   :  { %2384 = vmatprep.mubr.msk.f32.mxu1 %vm2856_vm1, %v2857_v14  ;;  %2606 = vmatpush3.bf16.msra.mxu0 %v2929_v6 }
   0xa   :  { %2597 = vmatpush3.bf16.msra.mxu1 %v2950_v13  ;;  %2607 = vmatprep.subr.bf16.mxu0 %v2855_v8 }
   0xb   :  { %2598 = vmatprep.subr.bf16.mxu1 %v2855_v8  ;;  %2367 = vmatprep.mubr.msk.f32.mxu0 %vm52_vm0, %v38_v54 }
   0xc   :  { %2368 = vmatmul.mubr.msk.f32.gmra.mrb[2].mxu0 %vm52_vm0, %v39_v55 }
   0xd   :  { %2385 = vmatmul.mubr.f32.vlgmr.msra.gmra.mrb[4].mxu1 %v2857_v14  ;;  %2609 = vmatpush3.bf16.msra.mxu0 %v2950_v13 }
   0xe   :  { %2600 = vmatpush3.bf16.msra.mxu1 %v2929_v6  ;;  %2395 = vmatprep.mubr.msk.f32.mxu1 %vm2856_vm1, %v2857_v14 }
   0xf   :  { %2601 = vmatprep.subr.bf16.mxu1 %v2855_v8  ;;  %2616 = vmatprep.subr.bf16.mxu0 %v2855_v8 }
  0x10   :  { %2406 = vmatprep.mubr.msk.f32.mxu0 %vm2856_vm1, %v2857_v14 }
  0x12   :  { %2603 = vmatpush3.bf16.msra.mxu1 %v2950_v13 }
  0x13   :  { %2610 = vmatprep.subr.bf16.mxu1 %v2855_v8 }
  0xd7   :  { %v2972_v15 = vpop.f32.mrb[0].mxu1 }
  0xd8   :  { %v2974_v16 = vpop.f32.mrb[1].mxu1 }
  0xda   :  { %v2366_v17 = vpop.f32.mrb[0].mxu0 }
  0xdb   :  { %v2981_v19 = vpop.f32.mrb[2].mxu1  ;;  %v143_v20 = vpop.f32.mrb[1].mxu0  ;;  %v149_v40 = vadd.f32 %v2366_v17, %v2979_v18 }
  0xdc   :  { %v2983_v21 = vpop.f32.mrb[3].mxu1  ;;  %v144_v22 = vadd.f32 %v2979_v18, %v143_v20 }
  0xdf   :  { %v2369_v59 = vpop.f32.mrb[2].mxu0 }
  0xe0   :  { %v261_v23 = vpop.f32.mrb[4].mxu1  ;;  %v153_v60 = vpop.f32.mrb[3].mxu0 }
  0xe1   :  { %v265_v24 = vadd.f32 %v261_v23, %v144_v22  ;;  %v2386_v25 = vpop.f32.mrb[5].mxu1  ;;  %v154_v62 = vadd.f32 %v2979_v18, %v153_v60  ;;  %v169_v60 = vadd.f32 %v2972_v15, %v2979_v18 }
  0xe2   :  { %v159_v25 = vadd.f32 %v2369_v59, %v2979_v18 }
  0xe3   :  { %2711 = vtanh.f32 %v265_v24  ;;  %v2201_v27 = vmul.f32 -1.442695, %v265_v24 }
  0xe5   :  { %2713 = vpow2.f32 %v2201_v27 }
  0xed   :  { %v2712_v26 = vpop.eup %2711 }
  0xee   :  { %275 = vrot.lane.b32.xlu0 %v2712_v26, %s2858_s10 }
  0xef   :  { %v2714_v28 = vpop.eup %2713 }
  0xf0   :  { %v269_v29 = vadd.f32 1.0, %v2714_v28 }
  0xf2   :  { %2715 = vrcp.f32 %v269_v29 }
  0xfc   :  { %v2716_v30 = vpop.eup %2715 }
  0xfd   :  { %v273_v33 = vmul.f32 0.0, %v2716_v30 }
 0x160   :  { %v276_v31 = vpop.permute.xlu0 %275 }
 0x161   :  { %v278_v32 = vmul.f32 %v2716_v30, %v276_v31 }
 0x163   :  { %280 = vrot.lane.b32.xlu0 %v278_v32, %s2859_s3 }
 0x1d5   :  { %v281_v34 = vpop.permute.xlu0 %280 }
 0x1d6   :  { %v283_v35 = vadd.f32 %v281_v34, %v273_v33 }
 0x1d8   :  { %2717 = vtanh.f32 %v283_v35 }
 0x1e2   :  { %v2718_v36 = vpop.eup %2717 }
 0x1e3   :  { %286 = vrot.lane.b32.xlu1 %v2718_v36, %s2858_s10 }
 0x255   :  { %v287_v37 = vpop.permute.xlu1 %286 }
 0x256   :  { %v289_v38 = vmul.f32 %v2716_v30, %v287_v37 }
 0x258   :  { %291 = vrot.lane.b32.xlu1 %v289_v38, %s2859_s3 }
 0x2ca   :  { %v292_v39 = vpop.permute.xlu1 %291 }
 0x2cb   :  { %294 = vst.msk [vmem:[#allocation2] sm:$0xff] %vm191_vm2, %v292_v39  ;;  %2396 = vmatmul.mubr.msk.f32.vlgmr.msra.gmra.mrb[6].mxu1 %vm191_vm2, %v292_v39 }
 0x2cc   :  { %2612 = vmatpush3.bf16.msra.mxu1 %v2929_v6  ;;  %2417 = vmatprep.mubr.msk.f32.mxu1 %vm2856_vm1, %v2857_v14 }
 0x2cd   :  { %2613 = vmatprep.subr.bf16.mxu1 %v2855_v8 }
 0x2d0   :  { %2615 = vmatpush3.bf16.msra.mxu1 %v2950_v13 }
 0x2d1   :  { %2622 = vmatprep.subr.bf16.mxu1 %v2855_v8 }
 0x39e   :  { %v365_v41 = vpop.f32.mrb[6].mxu1 }
 0x39f   :  { %v369_v42 = vadd.f32 %v365_v41, %v149_v40  ;;  %v2397_v43 = vpop.f32.mrb[7].mxu1 }
 0x3a0   :  { %v164_v43 = vadd.f32 %v2979_v18, %v2974_v16 }
 0x3a1   :  { %2719 = vtanh.f32 %v369_v42  ;;  %v2203_v45 = vmul.f32 -1.442695, %v369_v42 }
 0x3a3   :  { %2721 = vpow2.f32 %v2203_v45 }
 0x3ab   :  { %v2720_v44 = vpop.eup %2719 }
 0x3ac   :  { %379 = vrot.lane.b32.xlu0 %v2720_v44, %s2858_s10 }
 0x3ad   :  { %v2722_v46 = vpop.eup %2721 }
 0x3ae   :  { %v373_v47 = vadd.f32 1.0, %v2722_v46 }
 0x3b0   :  { %2723 = vrcp.f32 %v373_v47 }
 0x3ba   :  { %v2724_v48 = vpop.eup %2723 }
 0x3bb   :  { %v377_v51 = vmul.f32 %v2724_v48, %v283_v35 }
 0x41e   :  { %v380_v49 = vpop.permute.xlu0 %379 }
 0x41f   :  { %v382_v50 = vmul.f32 %v2724_v48, %v380_v49 }
 0x421   :  { %384 = vrot.lane.b32.xlu1 %v382_v50, %s2859_s3 }
 0x493   :  { %v385_v52 = vpop.permute.xlu1 %384 }
 0x494   :  { %v387_v53 = vadd.f32 %v385_v52, %v377_v51 }
 0x496   :  { %2725 = vtanh.f32 %v387_v53 }
 0x4a0   :  { %v2726_v56 = vpop.eup %2725 }
 0x4a1   :  { %390 = vrot.lane.b32.xlu0 %v2726_v56, %s2858_s10 }
 0x513   :  { %v391_v57 = vpop.permute.xlu0 %390 }
 0x514   :  { %v393_v58 = vmul.f32 %v2724_v48, %v391_v57 }
 0x516   :  { %395 = vrot.lane.b32.xlu1 %v393_v58, %s2859_s3 }
 0x588   :  { %v396_v61 = vpop.permute.xlu1 %395 }
 0x589   :  { %399 = vst.msk [vmem:[#allocation2 + $0x8] sm:$0xff] %vm191_vm2, %v396_v61  ;;  %2407 = vmatmul.mubr.msk.f32.vlgmr.msra.gmra.mrb[4].mxu0 %vm191_vm2, %v396_v61 }
 0x58a   :  { %2618 = vmatpush3.bf16.msra.mxu0 %v2929_v6  ;;  %2428 = vmatprep.mubr.msk.f32.mxu0 %vm2856_vm1, %v2857_v14 }
 0x58b   :  { %2619 = vmatprep.subr.bf16.mxu0 %v2855_v8 }
 0x58e   :  { %2621 = vmatpush3.bf16.msra.mxu0 %v2950_v13 }
 0x58f   :  { %2628 = vmatprep.subr.bf16.mxu0 %v2855_v8 }
 0x65c   :  { %v470_v63 = vpop.f32.mrb[4].mxu0 }
 0x65d   :  { %v474_v0 = vadd.f32 %v470_v63, %v154_v62  ;;  %v2408_v1 = vpop.f32.mrb[5].mxu0 }
 0x65f   :  { %2727 = vtanh.f32 %v474_v0  ;;  %v2205_v3 = vmul.f32 -1.442695, %v474_v0 }
 0x661   :  { %2729 = vpow2.f32 %v2205_v3 }
 0x669   :  { %v2728_v2 = vpop.eup %2727 }
 0x66a   :  { %484 = vrot.lane.b32.xlu0 %v2728_v2, %s2858_s10 }
 0x66b   :  { %v2730_v4 = vpop.eup %2729 }
 0x66c   :  { %v478_v5 = vadd.f32 1.0, %v2730_v4 }
 0x66e   :  { %2731 = vrcp.f32 %v478_v5 }
 0x678   :  { %v2732_v7 = vpop.eup %2731 }
 0x679   :  { %v482_v11 = vmul.f32 %v2732_v7, %v387_v53 }
 0x6dc   :  { %v485_v9 = vpop.permute.xlu0 %484 }
 0x6dd   :  { %v487_v10 = vmul.f32 %v2732_v7, %v485_v9  ;;  %v1042_v9 = vld [vmem:[%s3344_s4] sm:$0xff] }
 0x6df   :  { %489 = vrot.lane.b32.xlu1 %v487_v10, %s2859_s3  ;;  %v1043_v10 = vld [vmem:[%s3344_s4 + $0x8] sm:$0xff] }
 0x751   :  { %v490_v12 = vpop.permute.xlu1 %489 }
 0x752   :  { %v492_v17 = vadd.f32 %v490_v12, %v482_v11  ;;  %v2640_v11 = vpack.c.bf16 %v1043_v10, %v1042_v9 }
 0x754   :  { %2733 = vtanh.f32 %v492_v17 }
 0x75e   :  { %v2734_v20 = vpop.eup %2733 }
 0x75f   :  { %495 = vrot.lane.b32.xlu0 %v2734_v20, %s2858_s10 }
 0x7d1   :  { %v496_v22 = vpop.permute.xlu0 %495 }
 0x7d2   :  { %v498_v23 = vmul.f32 %v2732_v7, %v496_v22  ;;  %v1044_v22 = vld [vmem:[%s3344_s4 + $0x10] sm:$0xff] }
 0x7d4   :  { %500 = vrot.lane.b32.xlu1 %v498_v23, %s2859_s3  ;;  %v1045_v23 = vld [vmem:[%s3344_s4 + $0x18] sm:$0xff] }
 0x846   :  { %v501_v24 = vpop.permute.xlu1 %500 }
 0x847   :  { %504 = vst.msk [vmem:[#allocation2 + $0x10] sm:$0xff] %vm191_vm2, %v501_v24  ;;  %2418 = vmatmul.mubr.msk.f32.vlgmr.msra.gmra.mrb[8].mxu1 %vm191_vm2, %v501_v24  ;;  %v2644_v24 = vpack.c.bf16 %v1045_v23, %v1044_v22 }
 0x848   :  { %2624 = vmatpush3.bf16.msra.mxu1 %v2929_v6  ;;  %2439 = vmatprep.mubr.msk.f32.mxu1 %vm2856_vm1, %v2857_v14 }
 0x849   :  { %2625 = vmatprep.subr.bf16.mxu1 %v2855_v8 }
 0x84c   :  { %2627 = vmatpush3.bf16.msra.mxu1 %v2950_v13 }
 0x84d   :  { %2634 = vmatprep.subr.bf16.mxu1 %v2855_v8 }
 0x91a   :  { %v575_v26 = vpop.f32.mrb[8].mxu1 }
 0x91b   :  { %v579_v27 = vadd.f32 %v575_v26, %v159_v25  ;;  %v2419_v28 = vpop.f32.mrb[9].mxu1  ;;  %v1034_v26 = vld [vmem:[#allocation2] sm:$0xff] }
 0x91c   :  { %v1036_v28 = vld [vmem:[#allocation2 + $0x10] sm:$0xff] }
 0x91d   :  { %2735 = vtanh.f32 %v579_v27  ;;  %v2207_v30 = vmul.f32 -1.442695, %v579_v27  ;;  %v1035_v27 = vld [vmem:[#allocation2 + $0x8] sm:$0xff] }
 0x91f   :  { %2737 = vpow2.f32 %v2207_v30 }
 0x927   :  { %v2736_v29 = vpop.eup %2735 }
 0x928   :  { %589 = vrot.lane.b32.xlu0 %v2736_v29, %s2858_s10 }
 0x929   :  { %v2738_v31 = vpop.eup %2737 }
 0x92a   :  { %v583_v32 = vadd.f32 1.0, %v2738_v31 }
 0x92c   :  { %2739 = vrcp.f32 %v583_v32  ;;  %v174_v32 = vadd.f32 %v2979_v18, %v2983_v21 }
 0x936   :  { %v2740_v33 = vpop.eup %2739 }
 0x937   :  { %v587_v36 = vmul.f32 %v2740_v33, %v492_v17 }
 0x99a   :  { %v590_v34 = vpop.permute.xlu0 %589 }
 0x99b   :  { %v592_v35 = vmul.f32 %v2740_v33, %v590_v34 }
 0x99d   :  { %594 = vrot.lane.b32.xlu1 %v592_v35, %s2859_s3 }
 0xa0f   :  { %v595_v37 = vpop.permute.xlu1 %594 }
 0xa10   :  { %v597_v38 = vadd.f32 %v595_v37, %v587_v36 }
 0xa12   :  { %2741 = vtanh.f32 %v597_v38 }
 0xa1c   :  { %v2742_v39 = vpop.eup %2741 }
 0xa1d   :  { %600 = vrot.lane.b32.xlu0 %v2742_v39, %s2858_s10 }
 0xa8f   :  { %v601_v40 = vpop.permute.xlu0 %600 }
 0xa90   :  { %v603_v41 = vmul.f32 %v2740_v33, %v601_v40 }
 0xa92   :  { %605 = vrot.lane.b32.xlu1 %v603_v41, %s2859_s3 }
 0xb04   :  { %v606_v42 = vpop.permute.xlu1 %605 }
 0xb05   :  { %609 = vst.msk [vmem:[#allocation2 + $0x18] sm:$0xff] %vm191_vm2, %v606_v42  ;;  %2429 = vmatmul.mubr.msk.f32.vlgmr.msra.gmra.mrb[6].mxu0 %vm191_vm2, %v606_v42 }
 0xb06   :  { %2630 = vmatpush3.bf16.msra.mxu0 %v2929_v6  ;;  %2450 = vmatprep.mubr.msk.f32.mxu0 %vm2856_vm1, %v2857_v14 }
 0xb07   :  { %2631 = vmatprep.subr.bf16.mxu0 %v2855_v8 }
 0xb0a   :  { %2633 = vmatpush3.bf16.msra.mxu0 %v2950_v13 }
 0xb0b   :  { %2641 = vmatprep.subr.bf16.mxu0 %v2640_v11 }
 0xb0c   :  { %v1037_v29 = vld [vmem:[#allocation2 + $0x18] sm:$0xff] }
 0xbd8   :  { %v680_v44 = vpop.f32.mrb[6].mxu0 }
 0xbd9   :  { %v684_v45 = vadd.f32 %v680_v44, %v164_v43  ;;  %v2430_v46 = vpop.f32.mrb[7].mxu0 }
 0xbdb   :  { %2743 = vtanh.f32 %v684_v45  ;;  %v2209_v48 = vmul.f32 -1.442695, %v684_v45 }
 0xbdd   :  { %2745 = vpow2.f32 %v2209_v48 }
 0xbe5   :  { %v2744_v47 = vpop.eup %2743 }
 0xbe6   :  { %694 = vrot.lane.b32.xlu0 %v2744_v47, %s2858_s10 }
 0xbe7   :  { %v2746_v49 = vpop.eup %2745 }
 0xbe8   :  { %v688_v50 = vadd.f32 1.0, %v2746_v49 }
 0xbea   :  { %2747 = vrcp.f32 %v688_v50 }
 0xbf4   :  { %v2748_v51 = vpop.eup %2747 }
 0xbf5   :  { %v692_v54 = vmul.f32 %v2748_v51, %v597_v38 }
 0xc58   :  { %v695_v52 = vpop.permute.xlu0 %694 }
 0xc59   :  { %v697_v53 = vmul.f32 %v2748_v51, %v695_v52  ;;  %v1030_v52 = vld [vmem:[%s3345_s5] sm:$0xff] }
 0xc5b   :  { %699 = vrot.lane.b32.xlu1 %v697_v53, %s2859_s3  ;;  %v1031_v53 = vld [vmem:[%s3345_s5 + $0x8] sm:$0xff] }
 0xccd   :  { %v700_v55 = vpop.permute.xlu1 %699 }
 0xcce   :  { %v702_v16 = vadd.f32 %v700_v55, %v692_v54  ;;  %v3111_v54 = vpack.c.bf16 %v1031_v53, %v1030_v52  ;;  %v1032_v55 = vld [vmem:[%s3345_s5 + $0x10] sm:$0xff] }
 0xcd0   :  { %2749 = vtanh.f32 %v702_v16 }
 0xcda   :  { %v2750_v56 = vpop.eup %2749 }
 0xcdb   :  { %705 = vrot.lane.b32.xlu0 %v2750_v56, %s2858_s10 }
 0xd4d   :  { %v706_v57 = vpop.permute.xlu0 %705 }
 0xd4e   :  { %v708_v58 = vmul.f32 %v2748_v51, %v706_v57 }
 0xd50   :  { %710 = vrot.lane.b32.xlu1 %v708_v58, %s2859_s3 }
 0xdc2   :  { %v711_v59 = vpop.permute.xlu1 %710 }
 0xdc3   :  { %714 = vst.msk [vmem:[#allocation2 + $0x20] sm:$0xff] %vm191_vm2, %v711_v59  ;;  %2440 = vmatmul.mubr.msk.f32.vlgmr.msra.gmra.mrb[10].mxu1 %vm191_vm2, %v711_v59 }
 0xdc4   :  { %2636 = vmatpush3.bf16.msra.mxu1 %v2929_v6  ;;  %2461 = vmatprep.mubr.msk.f32.mxu1 %vm2856_vm1, %v2857_v14 }
 0xdc5   :  { %2637 = vmatprep.subr.bf16.mxu1 %v2855_v8 }
 0xdc8   :  { %2639 = vmatpush3.bf16.msra.mxu1 %v2950_v13 }
 0xdc9   :  { %2648 = vmatprep.subr.bf16.mxu1 %v2855_v8 }
 0xdca   :  { %v1038_v30 = vld [vmem:[#allocation2 + $0x20] sm:$0xff] }
 0xe96   :  { %v785_v61 = vpop.f32.mrb[10].mxu1 }
 0xe97   :  { %v789_v62 = vadd.f32 %v785_v61, %v169_v60  ;;  %v2441_v63 = vpop.f32.mrb[11].mxu1  ;;  %v179_v61 = vadd.f32 %v2981_v19, %v2979_v18 }
 0xe99   :  { %2751 = vtanh.f32 %v789_v62  ;;  %v2211_v6 = vmul.f32 -1.442695, %v789_v62 }
 0xe9b   :  { %2753 = vpow2.f32 %v2211_v6  ;;  %v3147_v6 = vld [vmem:[%s3346_s6] ss:$0 sm:$0xff] }
 0xea3   :  { %v2752_v0 = vpop.eup %2751 }
 0xea4   :  { %799 = vrot.lane.b32.xlu0 %v2752_v0, %s2858_s10 }
 0xea5   :  { %v2754_v1 = vpop.eup %2753 }
 0xea6   :  { %v793_v2 = vadd.f32 1.0, %v2754_v1 }
 0xea8   :  { %2755 = vrcp.f32 %v793_v2 }
 0xeb2   :  { %v2756_v3 = vpop.eup %2755 }
 0xeb3   :  { %v797_v5 = vmul.f32 %v2756_v3, %v702_v16  ;;  %v1033_v16 = vld [vmem:[%s3345_s5 + $0x18] sm:$0xff] }
 0xeb4   :  { %v3121_v56 = vpack.c.bf16 %v1033_v16, %v1032_v55 }
 0xf16   :  { %v800_v4 = vpop.permute.xlu0 %799 }
 0xf17   :  { %v802_v13 = vmul.f32 %v2756_v3, %v800_v4 }
 0xf19   :  { %804 = vrot.lane.b32.xlu1 %v802_v13, %s2859_s3 }
 0xf8b   :  { %v805_v7 = vpop.permute.xlu1 %804 }
 0xf8c   :  { %v807_v15 = vadd.f32 %v805_v7, %v797_v5 }
 0xf8e   :  { %2757 = vtanh.f32 %v807_v15 }
 0xf98   :  { %v2758_v12 = vpop.eup %2757 }
 0xf99   :  { %810 = vrot.lane.b32.xlu0 %v2758_v12, %s2858_s10 }
0x100b   :  { %v811_v17 = vpop.permute.xlu0 %810 }
0x100c   :  { %v813_v20 = vmul.f32 %v2756_v3, %v811_v17 }
0x100e   :  { %815 = vrot.lane.b32.xlu1 %v813_v20, %s2859_s3 }
0x1080   :  { %v816_v25 = vpop.permute.xlu1 %815 }
0x1081   :  { %819 = vst.msk [vmem:[#allocation2 + $0x28] sm:$0xff] %vm191_vm2, %v816_v25  ;;  %2451 = vmatmul.mubr.msk.f32.vlgmr.msra.gmra.mrb[8].mxu0 %vm191_vm2, %v816_v25 }
0x1082   :  { %2643 = vmatpush3.bf16.msra.mxu0 %v2640_v11  ;;  %2472 = vmatprep.mubr.msk.f32.mxu0 %vm191_vm2, %v1034_v26 }
0x1083   :  { %2645 = vmatprep.subr.bf16.mxu0 %v2644_v24 }
0x1086   :  { %2647 = vmatpush3.bf16.msra.mxu0 %v2644_v24 }
0x1087   :  { %2660 = vmatprep.subr.bf16.mxu0 %v2855_v8 }
0x1088   :  { %v1039_v31 = vld [vmem:[#allocation2 + $0x28] sm:$0xff] }
0x1089   :  { %2473 = vmatmul.mubr.msk.f32.vlgmr.msra.gmra.mrb[10].mxu0 %vm191_vm2, %v1035_v27 }
0x108a   :  { %2475 = vmatprep.mubr.msk.f32.mxu0 %vm191_vm2, %v1036_v28  ;;  %2662 = vmatpush3.bf16.msra.mxu0 %v3111_v54 }
0x108b   :  { %2663 = vmatprep.subr.bf16.mxu0 %v2855_v8 }
0x108d   :  { %2476 = vmatmul.mubr.msk.f32.gmra.mrb[12].mxu0 %vm191_vm2, %v1037_v29 }
0x108e   :  { %2478 = vmatprep.mubr.msk.f32.mxu0 %vm191_vm2, %v1038_v30  ;;  %2665 = vmatpush3.bf16.msra.mxu0 %v3121_v56 }
0x108f   :  { %2672 = vmatprep.subr.bf16.mxu0 %v2855_v8 }
0x1091   :  { %2479 = vmatmul.mubr.msk.f32.gmra.mrb[14].mxu0 %vm191_vm2, %v1039_v31 }
0x1154   :  { %v890_v33 = vpop.f32.mrb[8].mxu0 }
0x1155   :  { %v894_v34 = vadd.f32 %v890_v33, %v174_v32  ;;  %v2452_v35 = vpop.f32.mrb[9].mxu0 }
0x1157   :  { %2759 = vtanh.f32 %v894_v34  ;;  %v2213_v43 = vmul.f32 -1.442695, %v894_v34 }
0x1159   :  { %2761 = vpow2.f32 %v2213_v43 }
0x115c   :  { %v3089_v36 = vpop.f32.mrb[10].mxu0 }
0x115d   :  { %v1143_v37 = vpop.f32.mrb[11].mxu0 }
0x115e   :  { %v1144_v1 = vadd.f32 %v3147_v6, %v1143_v37 }
0x1160   :  { %v3091_v38 = vpop.f32.mrb[12].mxu0 }
0x1161   :  { %v2760_v39 = vpop.eup %2759  ;;  %v3093_v40 = vpop.f32.mrb[13].mxu0 }
0x1162   :  { %904 = vrot.lane.b32.xlu0 %v2760_v39, %s2858_s10  ;;  %v1149_v39 = vadd.f32 %v3089_v36, %v3147_v6 }
0x1163   :  { %v2762_v21 = vpop.eup %2761 }
0x1164   :  { %v3096_v41 = vpop.f32.mrb[14].mxu0  ;;  %v898_v44 = vadd.f32 1.0, %v2762_v21 }
0x1165   :  { %v3098_v42 = vpop.f32.mrb[15].mxu0 }
0x1166   :  { %2763 = vrcp.f32 %v898_v44 }
0x1170   :  { %v2764_v45 = vpop.eup %2763 }
0x1171   :  { %v902_v48 = vmul.f32 %v2764_v45, %v807_v15 }
0x11d4   :  { %v905_v46 = vpop.permute.xlu0 %904 }
0x11d5   :  { %v907_v47 = vmul.f32 %v2764_v45, %v905_v46 }
0x11d7   :  { %909 = vrot.lane.b32.xlu1 %v907_v47, %s2859_s3 }
0x1249   :  { %v910_v49 = vpop.permute.xlu1 %909 }
0x124a   :  { %v3101_v50 = vadd.f32 %v910_v49, %v902_v48 }
0x124c   :  { %2765 = vtanh.f32 %v3101_v50 }
0x1256   :  { %v2766_v51 = vpop.eup %2765 }
0x1257   :  { %915 = vrot.lane.b32.xlu0 %v2766_v51, %s2858_s10 }
0x12c9   :  { %v916_v57 = vpop.permute.xlu0 %915 }
0x12ca   :  { %v918_v58 = vmul.f32 %v2764_v45, %v916_v57 }
0x12cc   :  { %920 = vrot.lane.b32.xlu1 %v918_v58, %s2859_s3 }
0x133e   :  { %v921_v59 = vpop.permute.xlu1 %920 }
0x133f   :  { %924 = vst.msk [vmem:[#allocation2 + $0x30] sm:$0xff] %vm191_vm2, %v921_v59  ;;  %2462 = vmatmul.mubr.msk.f32.vlgmr.msra.gmra.mrb[12].mxu1 %vm191_vm2, %v921_v59 }
0x1340   :  { %2650 = vmatpush3.bf16.msra.mxu1 %v3111_v54  ;;  %2492 = vmatprep.mubr.msk.f32.mxu1 %vm2856_vm1, %v2857_v14 }
0x1341   :  { %2651 = vmatprep.subr.bf16.mxu1 %v2855_v8 }
0x1344   :  { %2653 = vmatpush3.bf16.msra.mxu1 %v3121_v56 }
0x1345   :  { %2654 = vmatprep.subr.bf16.mxu1 %v2855_v8 }
0x1346   :  { %v1040_v60 = vld [vmem:[#allocation2 + $0x30] sm:$0xff] }
0x1347   :  { %2493 = vmatmul.mubr.f32.vlgmr.msra.gmra.mrb[14].mxu1 %v2857_v14  ;;  %2481 = vmatprep.mubr.msk.f32.mxu0 %vm191_vm2, %v1040_v60 }
0x1348   :  { %2656 = vmatpush3.bf16.msra.mxu1 %v3111_v54  ;;  %2503 = vmatprep.mubr.msk.f32.mxu1 %vm2856_vm1, %v2857_v14 }
0x1349   :  { %2657 = vmatprep.subr.bf16.mxu1 %v2855_v8 }
0x134c   :  { %2659 = vmatpush3.bf16.msra.mxu1 %v3121_v56 }
0x134d   :  { %2666 = vmatprep.subr.bf16.mxu1 %v2855_v8 }
0x1412   :  { %v995_v62 = vpop.f32.mrb[12].mxu1 }
0x1413   :  { %v999_v63 = vadd.f32 %v995_v62, %v179_v61  ;;  %v2463_v0 = vpop.f32.mrb[13].mxu1 }
0x1415   :  { %v2215_v22 = vmul.f32 -1.442695, %v999_v63 }
0x141a   :  { %v1257_v2 = vpop.f32.mrb[14].mxu1 }
0x141b   :  { %v1261_v3 = vadd.f32 %v1257_v2, %v1144_v1  ;;  %v2494_v4 = vpop.f32.mrb[15].mxu1 }
0x141d   :  { %2767 = vtanh.f32 %v1261_v3  ;;  %v2225_v5 = vmul.f32 -1.442695, %v1261_v3 }
0x141f   :  { %2769 = vpow2.f32 %v2225_v5 }
0x1427   :  { %v2768_v13 = vpop.eup %2767 }
0x1428   :  { %1271 = vrot.lane.b32.xlu0 %v2768_v13, %s2858_s10 }
0x1429   :  { %v2770_v18 = vpop.eup %2769 }
0x142a   :  { %v1265_v19 = vadd.f32 1.0, %v2770_v18 }
0x142c   :  { %2771 = vrcp.f32 %v1265_v19 }
0x1436   :  { %v2772_v7 = vpop.eup %2771 }
0x1437   :  { %v1269_v10 = vmul.f32 0.0, %v2772_v7 }
0x149a   :  { %v1272_v15 = vpop.permute.xlu0 %1271 }
0x149b   :  { %v1274_v9 = vmul.f32 %v2772_v7, %v1272_v15 }
0x149d   :  { %1276 = vrot.lane.b32.xlu1 %v1274_v9, %s2859_s3 }
0x150f   :  { %v1277_v11 = vpop.permute.xlu1 %1276 }
0x1510   :  { %v1279_v12 = vadd.f32 %v1277_v11, %v1269_v10 }
0x1512   :  { %2773 = vtanh.f32 %v1279_v12 }
0x1513   :  { %2775 = vtanh.f32 %v999_v63  ;;  %v1154_v63 = vadd.f32 %v3147_v6, %v3093_v40 }
0x1514   :  { %2777 = vpow2.f32 %v2215_v22 }
0x151c   :  { %v2774_v17 = vpop.eup %2773 }
0x151d   :  { %1282 = vrot.lane.b32.xlu0 %v2774_v17, %s2858_s10  ;;  %v2776_v20 = vpop.eup %2775 }
0x151e   :  { %v2778_v23 = vpop.eup %2777 }
0x151f   :  { %v1003_v24 = vadd.f32 1.0, %v2778_v23 }
0x1521   :  { %1009 = vrot.lane.b32.xlu0 %v2776_v20, %s2858_s10  ;;  %2779 = vrcp.f32 %v1003_v24  ;;  %v1159_v20 = vadd.f32 %v3091_v38, %v3147_v6 }
0x152b   :  { %v2780_v27 = vpop.eup %2779 }
0x152c   :  { %v1007_v31 = vmul.f32 %v2780_v27, %v3101_v50 }
0x158f   :  { %v1283_v25 = vpop.permute.xlu0 %1282 }
0x1590   :  { %v1285_v26 = vmul.f32 %v2772_v7, %v1283_v25 }
0x1592   :  { %1287 = vrot.lane.b32.xlu1 %v1285_v26, %s2859_s3 }
0x1593   :  { %v1010_v28 = vpop.permute.xlu0 %1009 }
0x1594   :  { %v1012_v29 = vmul.f32 %v2780_v27, %v1010_v28 }
0x1596   :  { %1014 = vrot.lane.b32.xlu0 %v1012_v29, %s2859_s3 }
0x1604   :  { %v1288_v30 = vpop.permute.xlu1 %1287 }
0x1605   :  { %1290 = vst.msk [vmem:[#allocation2] sm:$0xff] %vm191_vm2, %v1288_v30  ;;  %2504 = vmatmul.mubr.msk.f32.vlgmr.msra.gmra.mrb[16].mxu1 %vm191_vm2, %v1288_v30 }
0x1606   :  { %2668 = vmatpush3.bf16.msra.mxu1 %v3111_v54  ;;  %2525 = vmatprep.mubr.msk.f32.mxu1 %vm2856_vm1, %v2857_v14 }
0x1607   :  { %2669 = vmatprep.subr.bf16.mxu1 %v2855_v8 }
0x1608   :  { %v1015_v32 = vpop.permute.xlu0 %1014 }
0x1609   :  { %v1017_v33 = vadd.f32 %v1015_v32, %v1007_v31 }
0x160a   :  { %2671 = vmatpush3.bf16.msra.mxu1 %v3121_v56 }
0x160b   :  { %2781 = vtanh.f32 %v1017_v33  ;;  %2678 = vmatprep.subr.bf16.mxu1 %v2855_v8 }
0x1615   :  { %v2782_v34 = vpop.eup %2781 }
0x1616   :  { %1020 = vrot.lane.b32.xlu0 %v2782_v34, %s2858_s10 }
0x1688   :  { %v1021_v35 = vpop.permute.xlu0 %1020 }
0x1689   :  { %v1023_v37 = vmul.f32 %v2780_v27, %v1021_v35 }
0x168b   :  { %1025 = vrot.lane.b32.xlu0 %v1023_v37, %s2859_s3 }
0x16d8   :  { %v1360_v43 = vpop.f32.mrb[16].mxu1 }
0x16d9   :  { %v1364_v21 = vadd.f32 %v1360_v43, %v1149_v39  ;;  %v2505_v44 = vpop.f32.mrb[17].mxu1  ;;  %v1164_v43 = vadd.f32 %v3147_v6, %v3098_v42 }
0x16db   :  { %2783 = vtanh.f32 %v1364_v21  ;;  %v2227_v48 = vmul.f32 -1.442695, %v1364_v21 }
0x16dd   :  { %2785 = vpow2.f32 %v2227_v48 }
0x16e5   :  { %v2784_v45 = vpop.eup %2783 }
0x16e6   :  { %1374 = vrot.lane.b32.xlu1 %v2784_v45, %s2858_s10 }
0x16e7   :  { %v2786_v49 = vpop.eup %2785 }
0x16e8   :  { %v1368_v36 = vadd.f32 1.0, %v2786_v49 }
0x16ea   :  { %2787 = vrcp.f32 %v1368_v36 }
0x16f4   :  { %v2788_v50 = vpop.eup %2787 }
0x16f5   :  { %v1372_v53 = vmul.f32 %v2788_v50, %v1279_v12 }
0x16fd   :  { %v1026_v46 = vpop.permute.xlu0 %1025 }
0x16fe   :  { %1029 = vst.msk [vmem:[#allocation2 + $0x38] sm:$0xff] %vm191_vm2, %v1026_v46 }
0x1705   :  { %v1041_v47 = vld [vmem:[#allocation2 + $0x38] sm:$0xff] }
0x1706   :  { %2482 = vmatmul.mubr.msk.f32.gmra.mrb[16].mxu0 %vm191_vm2, %v1041_v47 }
0x1707   :  { %2514 = vmatprep.mubr.msk.f32.mxu0 %vm2856_vm1, %v2857_v14 }
0x1758   :  { %v1375_v51 = vpop.permute.xlu1 %1374 }
0x1759   :  { %v1377_v52 = vmul.f32 %v2788_v50, %v1375_v51 }
0x175b   :  { %1379 = vrot.lane.b32.xlu1 %v1377_v52, %s2859_s3 }
0x17cd   :  { %v1380_v55 = vpop.permute.xlu1 %1379 }
0x17ce   :  { %v1382_v16 = vadd.f32 %v1380_v55, %v1372_v53 }
0x17d0   :  { %2789 = vtanh.f32 %v1382_v16 }
0x17d9   :  { %v3175_v57 = vpop.f32.mrb[16].mxu0 }
0x17da   :  { %v2790_v58 = vpop.eup %2789  ;;  %v3177_v59 = vpop.f32.mrb[17].mxu0 }
0x17db   :  { %1385 = vrot.lane.b32.xlu1 %v2790_v58, %s2858_s10 }
0x184d   :  { %v1386_v60 = vpop.permute.xlu1 %1385 }
0x184e   :  { %v1388_v61 = vmul.f32 %v2788_v50, %v1386_v60 }
0x1850   :  { %1390 = vrot.lane.b32.xlu1 %v1388_v61, %s2859_s3  ;;  %v1169_v61 = vadd.f32 %v3096_v41, %v3147_v6 }
0x18c2   :  { %v1391_v62 = vpop.permute.xlu1 %1390 }
0x18c3   :  { %1393 = vst.msk [vmem:[#allocation2 + $0x8] sm:$0xff] %vm191_vm2, %v1391_v62  ;;  %2515 = vmatmul.mubr.msk.f32.vlgmr.msra.gmra.mrb[18].mxu0 %vm191_vm2, %v1391_v62 }
0x18c4   :  { %2674 = vmatpush3.bf16.msra.mxu0 %v3111_v54  ;;  %2536 = vmatprep.mubr.msk.f32.mxu0 %vm2856_vm1, %v2857_v14 }
0x18c5   :  { %2675 = vmatprep.subr.bf16.mxu0 %v2855_v8 }
0x18c8   :  { %2677 = vmatpush3.bf16.msra.mxu0 %v3121_v56 }
0x18c9   :  { %2684 = vmatprep.subr.bf16.mxu0 %v2855_v8 }
0x1996   :  { %v1463_v0 = vpop.f32.mrb[18].mxu0 }
0x1997   :  { %v1467_v1 = vadd.f32 %v1463_v0, %v1154_v63  ;;  %v2516_v2 = vpop.f32.mrb[19].mxu0 }
0x1999   :  { %2791 = vtanh.f32 %v1467_v1  ;;  %v2229_v4 = vmul.f32 -1.442695, %v1467_v1 }
0x199b   :  { %2793 = vpow2.f32 %v2229_v4 }
0x19a3   :  { %v2792_v3 = vpop.eup %2791 }
0x19a4   :  { %1477 = vrot.lane.b32.xlu0 %v2792_v3, %s2858_s10 }
0x19a5   :  { %v2794_v13 = vpop.eup %2793 }
0x19a6   :  { %v1471_v5 = vadd.f32 1.0, %v2794_v13 }
0x19a8   :  { %2795 = vrcp.f32 %v1471_v5  ;;  %v2020_v5 = vld [vmem:[%s3347_s7] sm:$0xff] }
0x19b2   :  { %v2796_v18 = vpop.eup %2795 }
0x19b3   :  { %v1475_v15 = vmul.f32 %v2796_v18, %v1382_v16 }
0x1a16   :  { %v1478_v19 = vpop.permute.xlu0 %1477 }
0x1a17   :  { %v1480_v7 = vmul.f32 %v2796_v18, %v1478_v19 }
0x1a19   :  { %1482 = vrot.lane.b32.xlu1 %v1480_v7, %s2859_s3 }
0x1a8b   :  { %v1483_v9 = vpop.permute.xlu1 %1482 }
0x1a8c   :  { %v1485_v40 = vadd.f32 %v1483_v9, %v1475_v15 }
0x1a8e   :  { %2797 = vtanh.f32 %v1485_v40 }
0x1a98   :  { %v2798_v10 = vpop.eup %2797 }
0x1a99   :  { %1488 = vrot.lane.b32.xlu0 %v2798_v10, %s2858_s10  ;;  %v2023_v10 = vld [vmem:[%s3347_s7 + $0x18] sm:$0xff] }
0x1b0b   :  { %v1489_v11 = vpop.permute.xlu0 %1488 }
0x1b0c   :  { %v1491_v12 = vmul.f32 %v2796_v18, %v1489_v11  ;;  %v2021_v18 = vld [vmem:[%s3347_s7 + $0x8] sm:$0xff] }
0x1b0d   :  { %v2696_v19 = vpack.c.bf16 %v2021_v18, %v2020_v5 }
0x1b0e   :  { %1493 = vrot.lane.b32.xlu1 %v1491_v12, %s2859_s3 }
0x1b80   :  { %v1494_v17 = vpop.permute.xlu1 %1493 }
0x1b81   :  { %1496 = vst.msk [vmem:[#allocation2 + $0x10] sm:$0xff] %vm191_vm2, %v1494_v17  ;;  %2526 = vmatmul.mubr.msk.f32.vlgmr.msra.gmra.mrb[18].mxu1 %vm191_vm2, %v1494_v17  ;;  %v2012_v17 = vld [vmem:[#allocation2] sm:$0xff] }
0x1b82   :  { %2680 = vmatpush3.bf16.msra.mxu1 %v3111_v54  ;;  %2547 = vmatprep.mubr.msk.f32.mxu1 %vm2856_vm1, %v2857_v14 }
0x1b83   :  { %2681 = vmatprep.subr.bf16.mxu1 %v2855_v8 }
0x1b86   :  { %2683 = vmatpush3.bf16.msra.mxu1 %v3121_v56 }
0x1b87   :  { %2690 = vmatprep.subr.bf16.mxu1 %v2855_v8 }
0x1c54   :  { %v1566_v22 = vpop.f32.mrb[18].mxu1 }
0x1c55   :  { %v1570_v23 = vadd.f32 %v1566_v22, %v1159_v20  ;;  %v2527_v24 = vpop.f32.mrb[19].mxu1  ;;  %v2013_v20 = vld [vmem:[#allocation2 + $0x8] sm:$0xff]  ;;  %v2014_v22 = vld [vmem:[#allocation2 + $0x10] sm:$0xff] }
0x1c57   :  { %2799 = vtanh.f32 %v1570_v23  ;;  %v2231_v26 = vmul.f32 -1.442695, %v1570_v23 }
0x1c59   :  { %2801 = vpow2.f32 %v2231_v26  ;;  %v1174_v26 = vadd.f32 %v3147_v6, %v3177_v59 }
0x1c61   :  { %v2800_v25 = vpop.eup %2799 }
0x1c62   :  { %1580 = vrot.lane.b32.xlu0 %v2800_v25, %s2858_s10 }
0x1c63   :  { %v2802_v27 = vpop.eup %2801 }
0x1c64   :  { %v1574_v28 = vadd.f32 1.0, %v2802_v27 }
0x1c66   :  { %2803 = vrcp.f32 %v1574_v28 }
0x1c70   :  { %v2804_v29 = vpop.eup %2803 }
0x1c71   :  { %v1578_v32 = vmul.f32 %v2804_v29, %v1485_v40  ;;  %v2022_v40 = vld [vmem:[%s3347_s7 + $0x10] sm:$0xff] }
0x1c72   :  { %v2700_v11 = vpack.c.bf16 %v2023_v10, %v2022_v40 }
0x1cd4   :  { %v1581_v30 = vpop.permute.xlu0 %1580 }
0x1cd5   :  { %v1583_v31 = vmul.f32 %v2804_v29, %v1581_v30  ;;  %v3263_v30 = vld [vmem:[%s3348_s8] ss:$0 sm:$0xff] }
0x1cd7   :  { %1585 = vrot.lane.b32.xlu1 %v1583_v31, %s2859_s3 }
0x1d49   :  { %v1586_v33 = vpop.permute.xlu1 %1585 }
0x1d4a   :  { %v1588_v38 = vadd.f32 %v1586_v33, %v1578_v32 }
0x1d4c   :  { %2805 = vtanh.f32 %v1588_v38 }
0x1d56   :  { %v2806_v34 = vpop.eup %2805 }
0x1d57   :  { %1591 = vrot.lane.b32.xlu0 %v2806_v34, %s2858_s10  ;;  %v2160_v34 = vlaneseq }
0x1dc9   :  { %v1592_v35 = vpop.permute.xlu0 %1591 }
0x1dca   :  { %v1594_v37 = vmul.f32 %v2804_v29, %v1592_v35 }
0x1dcc   :  { %1596 = vrot.lane.b32.xlu1 %v1594_v37, %s2859_s3 }
0x1e3e   :  { %v1597_v39 = vpop.permute.xlu1 %1596 }
0x1e3f   :  { %1599 = vst.msk [vmem:[#allocation2 + $0x18] sm:$0xff] %vm191_vm2, %v1597_v39  ;;  %2537 = vmatmul.mubr.msk.f32.vlgmr.msra.gmra.mrb[20].mxu0 %vm191_vm2, %v1597_v39 }
0x1e40   :  { %2686 = vmatpush3.bf16.msra.mxu0 %v3111_v54  ;;  %2558 = vmatprep.mubr.msk.f32.mxu0 %vm2856_vm1, %v2857_v14 }
0x1e41   :  { %2687 = vmatprep.subr.bf16.mxu0 %v2855_v8 }
0x1e44   :  { %2689 = vmatpush3.bf16.msra.mxu0 %v3121_v56 }
0x1e45   :  { %2697 = vmatprep.subr.bf16.mxu0 %v2696_v19 }
0x1e46   :  { %v2015_v23 = vld [vmem:[#allocation2 + $0x18] sm:$0xff] }
0x1f12   :  { %v1669_v21 = vpop.f32.mrb[20].mxu0 }
0x1f13   :  { %v1673_v44 = vadd.f32 %v1669_v21, %v1164_v43  ;;  %v2538_v45 = vpop.f32.mrb[21].mxu0  ;;  %v3270_v21 = vand.u32 127, %v2160_v34 }
0x1f15   :  { %2807 = vtanh.f32 %v1673_v44  ;;  %v2233_v47 = vmul.f32 -1.442695, %v1673_v44  ;;  %vm2162_vm3 = vcmp.eq.s32.totalorder %v3270_v21, 0 }
0x1f17   :  { %2809 = vpow2.f32 %v2233_v47 }
0x1f1f   :  { %v2808_v46 = vpop.eup %2807 }
0x1f20   :  { %1683 = vrot.lane.b32.xlu0 %v2808_v46, %s2858_s10 }
0x1f21   :  { %v2810_v48 = vpop.eup %2809 }
0x1f22   :  { %v1677_v49 = vadd.f32 1.0, %v2810_v48 }
0x1f24   :  { %2811 = vrcp.f32 %v1677_v49 }
0x1f2e   :  { %v2812_v36 = vpop.eup %2811 }
0x1f2f   :  { %v1681_v52 = vmul.f32 %v2812_v36, %v1588_v38 }
0x1f92   :  { %v1684_v50 = vpop.permute.xlu0 %1683 }
0x1f93   :  { %v1686_v51 = vmul.f32 %v2812_v36, %v1684_v50 }
0x1f95   :  { %1688 = vrot.lane.b32.xlu1 %v1686_v51, %s2859_s3 }
0x2007   :  { %v1689_v53 = vpop.permute.xlu1 %1688 }
0x2008   :  { %v1691_v42 = vadd.f32 %v1689_v53, %v1681_v52 }
0x200a   :  { %2813 = vtanh.f32 %v1691_v42 }
0x2014   :  { %v2814_v55 = vpop.eup %2813 }
0x2015   :  { %1694 = vrot.lane.b32.xlu0 %v2814_v55, %s2858_s10 }
0x2087   :  { %v1695_v16 = vpop.permute.xlu0 %1694 }
0x2088   :  { %v1697_v58 = vmul.f32 %v2812_v36, %v1695_v16 }
0x208a   :  { %1699 = vrot.lane.b32.xlu1 %v1697_v58, %s2859_s3 }
0x20fc   :  { %v1700_v60 = vpop.permute.xlu1 %1699 }
0x20fd   :  { %1702 = vst.msk [vmem:[#allocation2 + $0x20] sm:$0xff] %vm191_vm2, %v1700_v60  ;;  %2548 = vmatmul.mubr.msk.f32.vlgmr.msra.gmra.mrb[20].mxu1 %vm191_vm2, %v1700_v60 }
0x20fe   :  { %2692 = vmatpush3.bf16.msra.mxu1 %v3111_v54  ;;  %2569 = vmatprep.mubr.msk.f32.mxu1 %vm2856_vm1, %v2857_v14 }
0x20ff   :  { %2693 = vmatprep.subr.bf16.mxu1 %v2855_v8 }
0x2102   :  { %2695 = vmatpush3.bf16.msra.mxu1 %v3121_v56 }
0x2104   :  { %v2016_v24 = vld [vmem:[#allocation2 + $0x20] sm:$0xff] }
0x21d0   :  { %v1772_v62 = vpop.f32.mrb[20].mxu1 }
0x21d1   :  { %v1776_v63 = vadd.f32 %v1772_v62, %v1169_v61  ;;  %v2549_v0 = vpop.f32.mrb[21].mxu1 }
0x21d3   :  { %2815 = vtanh.f32 %v1776_v63  ;;  %v2235_v2 = vmul.f32 -1.442695, %v1776_v63 }
0x21d5   :  { %2817 = vpow2.f32 %v2235_v2 }
0x21dd   :  { %v2816_v1 = vpop.eup %2815 }
0x21de   :  { %1786 = vrot.lane.b32.xlu0 %v2816_v1, %s2858_s10 }
0x21df   :  { %v2818_v54 = vpop.eup %2817 }
0x21e0   :  { %v1780_v3 = vadd.f32 1.0, %v2818_v54 }
0x21e2   :  { %2819 = vrcp.f32 %v1780_v3 }
0x21ec   :  { %v2820_v14 = vpop.eup %2819 }
0x21ed   :  { %v1784_v56 = vmul.f32 %v2820_v14, %v1691_v42 }
0x2250   :  { %v1787_v4 = vpop.permute.xlu0 %1786 }
0x2251   :  { %v1789_v8 = vmul.f32 %v2820_v14, %v1787_v4 }
0x2253   :  { %1791 = vrot.lane.b32.xlu1 %v1789_v8, %s2859_s3 }
0x22c5   :  { %v1792_v13 = vpop.permute.xlu1 %1791 }
0x22c6   :  { %v3233_v41 = vadd.f32 %v1792_v13, %v1784_v56 }
0x22c8   :  { %2821 = vtanh.f32 %v3233_v41 }
0x22d2   :  { %v2822_v7 = vpop.eup %2821 }
0x22d3   :  { %1797 = vrot.lane.b32.xlu0 %v2822_v7, %s2858_s10 }
0x2345   :  { %v1798_v15 = vpop.permute.xlu0 %1797 }
0x2346   :  { %v1800_v9 = vmul.f32 %v2820_v14, %v1798_v15 }
0x2348   :  { %1802 = vrot.lane.b32.xlu1 %v1800_v9, %s2859_s3 }
0x23ba   :  { %v1803_v12 = vpop.permute.xlu1 %1802 }
0x23bb   :  { %1805 = vst.msk [vmem:[#allocation2 + $0x28] sm:$0xff] %vm191_vm2, %v1803_v12  ;;  %2559 = vmatmul.mubr.msk.f32.vlgmr.msra.gmra.mrb[22].mxu0 %vm191_vm2, %v1803_v12 }
0x23bc   :  { %2699 = vmatpush3.bf16.msra.mxu0 %v2696_v19  ;;  %2580 = vmatprep.mubr.msk.f32.mxu0 %vm191_vm2, %v2012_v17 }
0x23bd   :  { %2701 = vmatprep.subr.bf16.mxu0 %v2700_v11 }
0x23c0   :  { %2703 = vmatpush3.bf16.msra.mxu0 %v2700_v11 }
0x23c2   :  { %v2017_v25 = vld [vmem:[#allocation2 + $0x28] sm:$0xff] }
0x23c3   :  { %2581 = vmatmul.mubr.msk.f32.vlgmr.msra.gmra.mrb[24].mxu0 %vm191_vm2, %v2013_v20 }
0x23c4   :  { %2583 = vmatprep.mubr.msk.f32.mxu0 %vm191_vm2, %v2014_v22 }
0x23c7   :  { %2584 = vmatmul.mubr.msk.f32.gmra.mrb[26].mxu0 %vm191_vm2, %v2015_v23 }
0x23c8   :  { %2586 = vmatprep.mubr.msk.f32.mxu0 %vm191_vm2, %v2016_v24 }
0x23cb   :  { %2587 = vmatmul.mubr.msk.f32.gmra.mrb[28].mxu0 %vm191_vm2, %v2017_v25 }
0x248e   :  { %v1875_v27 = vpop.f32.mrb[22].mxu0 }
0x248f   :  { %v1879_v28 = vadd.f32 %v1875_v27, %v1174_v26  ;;  %v2560_v29 = vpop.f32.mrb[23].mxu0 }
0x2491   :  { %2823 = vtanh.f32 %v1879_v28  ;;  %v2237_v61 = vmul.f32 -1.442695, %v1879_v28 }
0x2496   :  { %v2582_v31 = vpop.f32.mrb[24].mxu0 }
0x2497   :  { %v2127_v32 = vadd.f32 %v2582_v31, %v3263_v30  ;;  %v2121_v33 = vpop.f32.mrb[25].mxu0 }
0x2498   :  { %v2122_v38 = vadd.f32 %v3263_v30, %v2121_v33 }
0x2499   :  { %2825 = vtanh.f32 %v2127_v32 }
0x249a   :  { %2827 = vtanh.f32 %v2122_v38  ;;  %v2585_v35 = vpop.f32.mrb[26].mxu0 }
0x249b   :  { %v2824_v59 = vpop.eup %2823  ;;  %v2137_v37 = vadd.f32 %v2585_v35, %v3263_v30  ;;  %v2131_v39 = vpop.f32.mrb[27].mxu0 }
0x249c   :  { %v2132_v43 = vadd.f32 %v3263_v30, %v2131_v39  ;;  %1889 = vrot.lane.b32.xlu0 %v2824_v59, %s2858_s10 }
0x249d   :  { %2829 = vtanh.f32 %v2137_v37 }
0x249e   :  { %2831 = vtanh.f32 %v2132_v43  ;;  %v2588_v44 = vpop.f32.mrb[28].mxu0 }
0x249f   :  { %v2147_v45 = vadd.f32 %v2588_v44, %v3263_v30  ;;  %v2141_v46 = vpop.f32.mrb[29].mxu0 }
0x24a0   :  { %v2142_v47 = vadd.f32 %v3263_v30, %v2141_v46 }
0x24a1   :  { %2833 = vtanh.f32 %v2147_v45 }
0x24a2   :  { %2835 = vtanh.f32 %v2142_v47 }
0x24a3   :  { %v2826_v48 = vpop.eup %2825  ;;  %2837 = vpow2.f32 %v2237_v61 }
0x24a4   :  { %v2828_v49 = vpop.eup %2827  ;;  %v2172_v36 = vsel %vm2162_vm3, %v2127_v32, %v2826_v48 }
0x24a5   :  { %2181 = vst.msk [vmem:[%s3349_s9 + $0x8] sm:$0xff] %vm2179_vm4, %v2172_v36  ;;  %v2171_v50 = vsel %vm2162_vm3, %v2122_v38, %v2828_v49 }
0x24a6   :  { %2180 = vst.msk [vmem:[%s3349_s9] sm:$0xff] %vm2179_vm4, %v2171_v50 }
0x24a7   :  { %v2830_v51 = vpop.eup %2829 }
0x24a8   :  { %v2832_v52 = vpop.eup %2831  ;;  %v2174_v53 = vsel %vm2162_vm3, %v2137_v37, %v2830_v51 }
0x24a9   :  { %2183 = vst.msk [vmem:[%s3349_s9 + $0x18] sm:$0xff] %vm2179_vm4, %v2174_v53  ;;  %v2173_v42 = vsel %vm2162_vm3, %v2132_v43, %v2832_v52 }
0x24aa   :  { %2182 = vst.msk [vmem:[%s3349_s9 + $0x10] sm:$0xff] %vm2179_vm4, %v2173_v42 }
0x24ab   :  { %v2834_v55 = vpop.eup %2833 }
0x24ac   :  { %v2836_v16 = vpop.eup %2835  ;;  %v2176_v58 = vsel %vm2162_vm3, %v2147_v45, %v2834_v55 }
0x24ad   :  { %2185 = vst.msk [vmem:[%s3349_s9 + $0x28] sm:$0xff] %vm2179_vm4, %v2176_v58  ;;  %v2175_v60 = vsel %vm2162_vm3, %v2142_v47, %v2836_v16  ;;  %v2838_v62 = vpop.eup %2837 }
0x24ae   :  { %2184 = vst.msk [vmem:[%s3349_s9 + $0x20] sm:$0xff] %vm2179_vm4, %v2175_v60  ;;  %v1883_v63 = vadd.f32 1.0, %v2838_v62 }
0x24b0   :  { %2839 = vrcp.f32 %v1883_v63 }
0x24ba   :  { %v2840_v0 = vpop.eup %2839 }
0x24bb   :  { %v1887_v54 = vmul.f32 %v2840_v0, %v3233_v41  ;;  %v1179_v41 = vadd.f32 %v3175_v57, %v3147_v6 }
0x250e   :  { %v1890_v1 = vpop.permute.xlu0 %1889 }
0x250f   :  { %v1892_v2 = vmul.f32 %v2840_v0, %v1890_v1 }
0x2511   :  { %1894 = vrot.lane.b32.xlu1 %v1892_v2, %s2859_s3 }
0x2583   :  { %v1895_v3 = vpop.permute.xlu1 %1894 }
0x2584   :  { %v1897_v14 = vadd.f32 %v1895_v3, %v1887_v54 }
0x2586   :  { %2841 = vtanh.f32 %v1897_v14 }
0x2590   :  { %v2842_v4 = vpop.eup %2841 }
0x2591   :  { %1900 = vrot.lane.b32.xlu0 %v2842_v4, %s2858_s10 }
0x2603   :  { %v1901_v8 = vpop.permute.xlu0 %1900 }
0x2604   :  { %v1903_v56 = vmul.f32 %v2840_v0, %v1901_v8 }
0x2606   :  { %1905 = vrot.lane.b32.xlu1 %v1903_v56, %s2859_s3 }
0x2678   :  { %v1906_v13 = vpop.permute.xlu1 %1905 }
0x2679   :  { %1908 = vst.msk [vmem:[#allocation2 + $0x30] sm:$0xff] %vm191_vm2, %v1906_v13  ;;  %2570 = vmatmul.mubr.msk.f32.vlgmr.msra.gmra.mrb[22].mxu1 %vm191_vm2, %v1906_v13 }
0x2680   :  { %v2018_v5 = vld [vmem:[#allocation2 + $0x30] sm:$0xff] }
0x2681   :  { %2589 = vmatprep.mubr.msk.f32.mxu0 %vm191_vm2, %v2018_v5 }
0x274c   :  { %v1978_v18 = vpop.f32.mrb[22].mxu1 }
0x274d   :  { %v1982_v19 = vadd.f32 %v1978_v18, %v1179_v41  ;;  %v2571_v7 = vpop.f32.mrb[23].mxu1 }
0x274f   :  { %2843 = vtanh.f32 %v1982_v19  ;;  %v2239_v9 = vmul.f32 -1.442695, %v1982_v19 }
0x2751   :  { %2845 = vpow2.f32 %v2239_v9 }
0x2759   :  { %v2844_v15 = vpop.eup %2843 }
0x275a   :  { %1992 = vrot.lane.b32.xlu0 %v2844_v15, %s2858_s10 }
0x275b   :  { %v2846_v40 = vpop.eup %2845 }
0x275c   :  { %v1986_v10 = vadd.f32 1.0, %v2846_v40 }
0x275e   :  { %2847 = vrcp.f32 %v1986_v10 }
0x2768   :  { %v2848_v11 = vpop.eup %2847 }
0x2769   :  { %v1990_v20 = vmul.f32 %v2848_v11, %v1897_v14 }
0x27cc   :  { %v1993_v12 = vpop.permute.xlu0 %1992 }
0x27cd   :  { %v1995_v17 = vmul.f32 %v2848_v11, %v1993_v12 }
0x27cf   :  { %1997 = vrot.lane.b32.xlu1 %v1995_v17, %s2859_s3 }
0x2841   :  { %v1998_v22 = vpop.permute.xlu1 %1997 }
0x2842   :  { %v2000_v6 = vadd.f32 %v1998_v22, %v1990_v20 }
0x2844   :  { %2849 = vtanh.f32 %v2000_v6 }
0x284e   :  { %v2850_v57 = vpop.eup %2849 }
0x284f   :  { %2003 = vrot.lane.b32.xlu0 %v2850_v57, %s2858_s10 }
0x28c1   :  { %v2004_v23 = vpop.permute.xlu0 %2003 }
0x28c2   :  { %v2006_v24 = vmul.f32 %v2848_v11, %v2004_v23 }
0x28c4   :  { %2008 = vrot.lane.b32.xlu1 %v2006_v24, %s2859_s3 }
0x2936   :  { %v2009_v25 = vpop.permute.xlu1 %2008 }
0x2937   :  { %2011 = vst.msk [vmem:[#allocation2 + $0x38] sm:$0xff] %vm191_vm2, %v2009_v25 }
0x293e   :  { %v2019_v26 = vld [vmem:[#allocation2 + $0x38] sm:$0xff] }
0x293f   :  { %2590 = vmatmul.mubr.msk.f32.gmra.mrb[30].mxu0 %vm191_vm2, %v2019_v26 }
0x2a12   :  { %v2591_v27 = vpop.f32.mrb[30].mxu0 }
0x2a13   :  { %v2157_v28 = vadd.f32 %v2591_v27, %v3263_v30  ;;  %v2151_v29 = vpop.f32.mrb[31].mxu0 }
0x2a14   :  { %v2152_v31 = vadd.f32 %v3263_v30, %v2151_v29 }
0x2a15   :  { %2851 = vtanh.f32 %v2157_v28 }
0x2a16   :  { %2853 = vtanh.f32 %v2152_v31 }
0x2a1f   :  { %v2852_v32 = vpop.eup %2851 }
0x2a20   :  { %v2854_v33 = vpop.eup %2853  ;;  %v2178_v38 = vsel %vm2162_vm3, %v2157_v28, %v2852_v32 }
0x2a21   :  { %2187 = vst.msk [vmem:[%s3349_s9 + $0x38] sm:$0xff] %vm2179_vm4, %v2178_v38  ;;  %v2177_v34 = vsel %vm2162_vm3, %v2152_v31, %v2854_v33 }
0x2a22   :  { %2186 = vst.msk [vmem:[%s3349_s9 + $0x30] sm:$0xff] %vm2179_vm4, %v2177_v34 }

</bundles_post_ra>
